<compile_context>
chip_gen: v5e
topology: v5e:2x2
jax: 0.10.0
libtpu: 0.0.40
codegen_flags: <defaults>
</compile_context>

<pallas_src>
import jax
import jax.numpy as jnp
import numpy as np
from jax import lax
from jax.experimental import pallas as pl
from jax.experimental.pallas import tpu as pltpu

GES = 8          # graph_embedding_size
HID = 32         # padded feature width used inside the kernel

# --- packed weight-slab row offsets (each matrix block is 8-row aligned) ---
# rows 0..8 : w1a_c0, w1a_ea, b1a, b1b, w2a_c0, b2a, b2b, bh1, bh2  (one per row)
R_W1A = 16       # (32, 32)  mlp1 layer-1 weight rows for the embedding part
R_W1B = 48       # (32, 32)  mlp1 layer-2
R_W2  = 80       # (64, 32)  mlp2 layer-1, stacked [rest-part ; aggr-part]
R_W2B = 144      # (32, 32)  mlp2 layer-2
R_WH1 = 176      # (32, 32)  h2o layer-1
R_WH2 = 208      # (32, 32)  h2o layer-2
K_SLAB = 240


def _mpnn_kernel(edges_ref, ea_ref, col0_ref, rest_ref, slab_ref, out_ref):
    E = edges_ref.shape[0]
    N = col0_ref.shape[0]
    f32 = jnp.float32
    NEG = jnp.float32(-1e30)

    def dot(a, b):
        return jnp.dot(a, b, preferred_element_type=f32)

    relu = lambda v: jnp.maximum(v, 0.0)

    src = edges_ref[:, 0:1]          # (E, 1) int32, -1 on padded edges
    dst = edges_ref[:, 1:2]          # (E, 1) int32, -1 on padded edges
    ea = ea_ref[...]                 # (E, 1)
    col0 = col0_ref[...]             # (N, 1)  pass-through node column
    rest = rest_ref[...]             # (N, 32) trainable embedding (cols 8..31 zero)

    # --- weight slab views (static slices of one VMEM input; zero-padded) ---
    w1a_c0 = slab_ref[0:1, :]
    w1a_ea = slab_ref[1:2, :]
    b1a    = slab_ref[2:3, :]
    b1b    = slab_ref[3:4, :]
    w2a_c0 = slab_ref[4:5, :]
    b2a    = slab_ref[5:6, :]
    b2b    = slab_ref[6:7, :]
    bh1    = slab_ref[7:8, :]
    bh2    = slab_ref[8:9, :]
    w1a_r  = slab_ref[R_W1A:R_W1A + HID, :]        # (32, 32)
    w1b    = slab_ref[R_W1B:R_W1B + HID, :]        # (32, 32)
    w2     = slab_ref[R_W2:R_W2 + 2 * HID, :]      # (64, 32)
    w2b    = slab_ref[R_W2B:R_W2B + HID, :]        # (32, 32)
    wh1    = slab_ref[R_WH1:R_WH1 + HID, :]        # (32, 32)
    wh2    = slab_ref[R_WH2:R_WH2 + HID, :]        # (32, 32)

    # --- loop-invariant graph structure (hoisted out of the 3-layer loop) ---
    # gather matrix: G[e, n] = (src[e] == n); padded edges (src == -1) -> zero row
    G = (lax.broadcasted_iota(jnp.int32, (E, N), 1) == src).astype(f32)        # (E, N)
    # scatter-max mask: mask3[n, e, 0] = (dst[e] == n); padded edges never match
    mask3 = lax.broadcasted_iota(jnp.int32, (N, E, 1), 0) == dst[None]         # (N, E, 1)
    # nodes with no incoming edge -> aggregation is 0 (PyG convention)
    has_in = jnp.sum(mask3.astype(f32), axis=1) > 0.0                          # (N, 1)

    # --- loop-invariant affine contributions (col0 / edge_attr never change) ---
    msg_const = dot(G, col0) * w1a_c0 + ea * w1a_ea + b1a                      # (E, 32)
    upd_const = col0 * w2a_c0 + b2a                                            # (N, 32)
    b1b_e = jnp.broadcast_to(b1b, (E, HID))                                    # hoisted broadcasts
    b2b_n = jnp.broadcast_to(b2b, (N, HID))

    for _ in range(3):  # three GConv applications
        # message: mlp1(cat[x_j, edge_attr])
        rest_j = dot(G, rest)                                                  # (E, 32)
        h = relu(dot(rest_j, w1a_r) + msg_const)                               # (E, 32)
        msg = relu(dot(h, w1b) + b1b_e)                                        # (E, 32)

        # aggregate: per-destination-node max over incoming edges (single masked max)
        masked = jnp.where(mask3, msg[None], NEG)                              # (N, E, 32)
        aggr = jnp.where(has_in, jnp.max(masked, axis=1), 0.0)                 # (N, 32)

        # update: cat[x[:, :1], mlp2(cat[x, aggr])]  (col0 is carried separately)
        xa = jnp.concatenate([rest, aggr], axis=-1)                            # (N, 64)
        t = relu(dot(xa, w2) + upd_const)                                      # (N, 32)
        rest = relu(dot(t, w2b) + b2b_n)                                       # (N, 32)

    # --- h2o head on out[:, 1:] ---
    hh = relu(dot(rest, wh1) + bh1)                                            # (N, 32)
    logits = dot(hh, wh2) + bh2                                                # (N, 32); col 0 real
    out_ref[...] = jax.nn.sigmoid(logits[:, 0:1])


def pack_params(params):
    """Pack all weights/biases into one zero-padded (K_SLAB, 32) f32 slab."""
    (W1a, b1a, W1b, b1b, W2a, b2a, W2b, b2b, Wh1, bh1, Wh2, bh2) = [
        jnp.asarray(p, jnp.float32) for p in params]
    slab = jnp.zeros((K_SLAB, HID), jnp.float32)
    # per-row vectors
    slab = slab.at[0, :].set(W1a[0])                 # mlp1 l1 weight row for x[:, 0]
    slab = slab.at[1, :].set(W1a[1 + GES])           # mlp1 l1 weight row for edge_attr
    slab = slab.at[2, :].set(b1a)
    slab = slab.at[3, :].set(b1b)
    slab = slab.at[4, :16].set(W2a[0])               # mlp2 l1 weight row for x[:, 0]
    slab = slab.at[5, :16].set(b2a)
    slab = slab.at[6, :GES].set(b2b)
    slab = slab.at[7, :16].set(bh1)
    slab = slab.at[8, 0].set(bh2[0])
    # matrices (zero-padded to 32/64 rows x 32 cols)
    slab = slab.at[R_W1A:R_W1A + GES, :].set(W1a[1:1 + GES])           # (8, 32)
    slab = slab.at[R_W1B:R_W1B + 32, :].set(W1b)                       # (32, 32)
    slab = slab.at[R_W2:R_W2 + GES, :16].set(W2a[1:1 + GES])           # rest part (8, 16)
    slab = slab.at[R_W2 + 32:R_W2 + 64, :16].set(W2a[1 + GES:])        # aggr part (32, 16)
    slab = slab.at[R_W2B:R_W2B + 16, :GES].set(W2b)                    # (16, 8)
    slab = slab.at[R_WH1:R_WH1 + GES, :16].set(Wh1)                    # (8, 16)
    slab = slab.at[R_WH2:R_WH2 + 16, 0:1].set(Wh2)                     # (16, 1)
    return slab


def centralized_mpnn_forward(x, edge_attr, edge_index, params):
    """x: (N, 1+GES) f32, edge_attr: (E, 1) f32, edge_index: (2, E) int."""
    x = jnp.asarray(x, jnp.float32)
    edge_attr = jnp.asarray(edge_attr, jnp.float32).reshape(-1, 1)
    N = x.shape[0]
    E = edge_index.shape[1]
    Np = max(8, ((N + 7) // 8) * 8)
    Ep = max(8, ((E + 7) // 8) * 8)

    col0 = jnp.zeros((Np, 1), jnp.float32).at[:N].set(x[:, :1])
    rest = jnp.zeros((Np, HID), jnp.float32).at[:N, :GES].set(x[:, 1:1 + GES])
    ea = jnp.zeros((Ep, 1), jnp.float32).at[:E].set(edge_attr)
    # Padded edges use index -1 (never equal to any node in [0, Np)) — the kernel
    # relies on this invariant for both the gather matrix and the scatter-max mask.
    edges = jnp.full((Ep, 2), -1, jnp.int32)
    edges = edges.at[:E, 0].set(edge_index[0].astype(jnp.int32))
    edges = edges.at[:E, 1].set(edge_index[1].astype(jnp.int32))

    slab = pack_params(params)

    out = pl.pallas_call(
        _mpnn_kernel,
        out_shape=jax.ShapeDtypeStruct((Np, 1), jnp.float32),
        in_specs=[pl.BlockSpec(memory_space=pltpu.MemorySpace.VMEM)] * 5,
        out_specs=pl.BlockSpec(memory_space=pltpu.MemorySpace.VMEM),
    )(edges, ea, col0, rest, slab)
    return out[:N]


def ref_forward(x, edge_attr, edge_index, params):
    """Pure-JAX reference matching the PyTorch module semantics."""
    (W1a, b1a, W1b, b1b, W2a, b2a, W2b, b2b, Wh1, bh1, Wh2, bh2) = params
    src, dst = edge_index[0], edge_index[1]
    N = x.shape[0]
    relu = lambda v: jnp.maximum(v, 0.0)
    for _ in range(3):
        xj = x[src]
        msg = relu(relu(jnp.concatenate([xj, edge_attr], 1) @ W1a + b1a) @ W1b + b1b)
        aggr = jax.ops.segment_max(msg, dst, num_segments=N)
        aggr = jnp.where(jnp.isfinite(aggr), aggr, 0.0)   # empty segments -> 0
        comb = relu(relu(jnp.concatenate([x, aggr], 1) @ W2a + b2a) @ W2b + b2b)
        x = jnp.concatenate([x[:, :1], comb], 1)
    h = relu(x[:, 1:] @ Wh1 + bh1)
    return jax.nn.sigmoid(h @ Wh2 + bh2)


if __name__ == "__main__":
    key = jax.random.PRNGKey(0)
    ks = jax.random.split(key, 16)

    N, E = 8, 13
    F = 1 + GES  # 9 node features

    x = jax.random.normal(ks[0], (N, F), jnp.float32)
    edge_attr = jax.random.normal(ks[1], (E, 1), jnp.float32)
    # node 7 has no incoming edge (exercises the empty-max convention);
    # E = 13 exercises the padded-edge path inside the kernel.
    src = jnp.array([0, 1, 2, 3, 4, 5, 6, 7, 0, 2, 4, 6, 1], jnp.int32)
    dst = jnp.array([1, 2, 3, 4, 5, 6, 0, 0, 3, 5, 1, 2, 6], jnp.int32)
    edge_index = jnp.stack([src, dst])

    def init(k, shape, scale=0.3):
        return (scale * jax.random.normal(k, shape)).astype(jnp.float32)

    params = (
        init(ks[2], (2 + GES, 32)), init(ks[3], (32,)),        # mlp1 layer 1
        init(ks[4], (32, 32)),      init(ks[5], (32,)),        # mlp1 layer 2
        init(ks[6], (33 + GES, 16)), init(ks[7], (16,)),       # mlp2 layer 1
        init(ks[8], (16, GES)),     init(ks[9], (GES,)),       # mlp2 layer 2
        init(ks[10], (GES, 16)),    init(ks[11], (16,)),       # h2o layer 1
        init(ks[12], (16, 1)),      init(ks[13], (1,)),        # h2o layer 2 (sigmoid)
    )

    out = jax.block_until_ready(centralized_mpnn_forward(x, edge_attr, edge_index, params))
    ref = jax.block_until_ready(ref_forward(x, edge_attr, edge_index, params))

    assert out.shape == (N, 1)
    np.testing.assert_allclose(np.asarray(out), np.asarray(ref), rtol=1e-3, atol=1e-3)
    print("KERNEL_OK")
</pallas_src>

<mosaic_0001>
module attributes {stable_mosaic.version = 11 : i64} {
  func.func @_mpnn_kernel(%arg0: memref<16x2xi32, #tpu.memory_space<vmem>>, %arg1: memref<16x1xf32, #tpu.memory_space<vmem>>, %arg2: memref<8x1xf32, #tpu.memory_space<vmem>>, %arg3: memref<8x32xf32, #tpu.memory_space<vmem>>, %arg4: memref<240x32xf32, #tpu.memory_space<vmem>>, %arg5: memref<8x1xf32, #tpu.memory_space<vmem>>) attributes {dimension_semantics = [], scalar_prefetch = 0 : i64, scratch_operands = 0 : i64, tpu.core_type = #tpu.core_type<tc>} {
    %c0 = arith.constant 0 : index
    %c0_0 = arith.constant 0 : index
    %0 = vector.load %arg0[%c0, %c0_0] : memref<16x2xi32, #tpu.memory_space<vmem>>, vector<16x1xi32>
    %c0_1 = arith.constant 0 : index
    %c1 = arith.constant 1 : index
    %1 = vector.load %arg0[%c0_1, %c1] : memref<16x2xi32, #tpu.memory_space<vmem>>, vector<16x1xi32>
    %c0_2 = arith.constant 0 : index
    %c0_3 = arith.constant 0 : index
    %2 = vector.load %arg1[%c0_2, %c0_3] : memref<16x1xf32, #tpu.memory_space<vmem>>, vector<16x1xf32>
    %c0_4 = arith.constant 0 : index
    %c0_5 = arith.constant 0 : index
    %3 = vector.load %arg2[%c0_4, %c0_5] : memref<8x1xf32, #tpu.memory_space<vmem>>, vector<8x1xf32>
    %c0_6 = arith.constant 0 : index
    %c0_7 = arith.constant 0 : index
    %4 = vector.load %arg3[%c0_6, %c0_7] : memref<8x32xf32, #tpu.memory_space<vmem>>, vector<8x32xf32>
    %c0_8 = arith.constant 0 : index
    %c0_9 = arith.constant 0 : index
    %5 = vector.load %arg4[%c0_8, %c0_9] : memref<240x32xf32, #tpu.memory_space<vmem>>, vector<1x32xf32>
    %c1_10 = arith.constant 1 : index
    %c0_11 = arith.constant 0 : index
    %6 = vector.load %arg4[%c1_10, %c0_11] : memref<240x32xf32, #tpu.memory_space<vmem>>, vector<1x32xf32>
    %c2 = arith.constant 2 : index
    %c0_12 = arith.constant 0 : index
    %7 = vector.load %arg4[%c2, %c0_12] : memref<240x32xf32, #tpu.memory_space<vmem>>, vector<1x32xf32>
    %c3 = arith.constant 3 : index
    %c0_13 = arith.constant 0 : index
    %8 = vector.load %arg4[%c3, %c0_13] : memref<240x32xf32, #tpu.memory_space<vmem>>, vector<1x32xf32>
    %c4 = arith.constant 4 : index
    %c0_14 = arith.constant 0 : index
    %9 = vector.load %arg4[%c4, %c0_14] : memref<240x32xf32, #tpu.memory_space<vmem>>, vector<1x32xf32>
    %c5 = arith.constant 5 : index
    %c0_15 = arith.constant 0 : index
    %10 = vector.load %arg4[%c5, %c0_15] : memref<240x32xf32, #tpu.memory_space<vmem>>, vector<1x32xf32>
    %c6 = arith.constant 6 : index
    %c0_16 = arith.constant 0 : index
    %11 = vector.load %arg4[%c6, %c0_16] : memref<240x32xf32, #tpu.memory_space<vmem>>, vector<1x32xf32>
    %c7 = arith.constant 7 : index
    %c0_17 = arith.constant 0 : index
    %12 = vector.load %arg4[%c7, %c0_17] : memref<240x32xf32, #tpu.memory_space<vmem>>, vector<1x32xf32>
    %c8 = arith.constant 8 : index
    %c0_18 = arith.constant 0 : index
    %13 = vector.load %arg4[%c8, %c0_18] : memref<240x32xf32, #tpu.memory_space<vmem>>, vector<1x32xf32>
    %c16 = arith.constant 16 : index
    %c0_19 = arith.constant 0 : index
    %14 = vector.load %arg4[%c16, %c0_19] : memref<240x32xf32, #tpu.memory_space<vmem>>, vector<32x32xf32>
    %c48 = arith.constant 48 : index
    %c0_20 = arith.constant 0 : index
    %15 = vector.load %arg4[%c48, %c0_20] : memref<240x32xf32, #tpu.memory_space<vmem>>, vector<32x32xf32>
    %c80 = arith.constant 80 : index
    %c0_21 = arith.constant 0 : index
    %16 = vector.load %arg4[%c80, %c0_21] : memref<240x32xf32, #tpu.memory_space<vmem>>, vector<64x32xf32>
    %c144 = arith.constant 144 : index
    %c0_22 = arith.constant 0 : index
    %17 = vector.load %arg4[%c144, %c0_22] : memref<240x32xf32, #tpu.memory_space<vmem>>, vector<32x32xf32>
    %c176 = arith.constant 176 : index
    %c0_23 = arith.constant 0 : index
    %18 = vector.load %arg4[%c176, %c0_23] : memref<240x32xf32, #tpu.memory_space<vmem>>, vector<32x32xf32>
    %c208 = arith.constant 208 : index
    %c0_24 = arith.constant 0 : index
    %19 = vector.load %arg4[%c208, %c0_24] : memref<240x32xf32, #tpu.memory_space<vmem>>, vector<32x32xf32>
    %20 = tpu.iota {dimensions = array<i32: 1>} : vector<16x8xi32>
    %21 = vector.broadcast %0 : vector<16x1xi32> to vector<16x8xi32>
    %22 = arith.cmpi eq, %20, %21 : vector<16x8xi32>
    %23 = arith.extui %22 : vector<16x8xi1> to vector<16x8xi32>
    %24 = arith.sitofp %23 : vector<16x8xi32> to vector<16x8xf32>
    %25 = tpu.iota {dimensions = array<i32: 0>} : vector<8x16x1xi32>
    %26 = vector.shape_cast %1 : vector<16x1xi32> to vector<1x16x1xi32>
    %27 = vector.broadcast %26 : vector<1x16x1xi32> to vector<8x16x1xi32>
    %28 = arith.cmpi eq, %25, %27 : vector<8x16x1xi32>
    %29 = arith.extui %28 : vector<8x16x1xi1> to vector<8x16x1xi32>
    %30 = arith.sitofp %29 : vector<8x16x1xi32> to vector<8x16x1xf32>
    %cst = arith.constant dense<0.000000e+00> : vector<8x1xf32>
    %31 = vector.multi_reduction <add>, %30, %cst [1] : vector<8x16x1xf32> to vector<8x1xf32>
    %cst_25 = arith.constant 0.000000e+00 : f32
    %32 = vector.broadcast %cst_25 : f32 to vector<8x1xf32>
    %33 = arith.cmpf ogt, %31, %32 : vector<8x1xf32>
    %cst_26 = arith.constant dense<0.000000e+00> : vector<16x1xf32>
    %34 = tpu.matmul %24, %3, %cst_26 {dimension_numbers = #tpu.dot_dimension_numbers<[1], [0], [0], [1], [0, 0, 1, 1], [], []>} : vector<16x8xf32>, vector<8x1xf32>, vector<16x1xf32> -> vector<16x1xf32>
    %35 = vector.broadcast %34 : vector<16x1xf32> to vector<16x32xf32>
    %36 = vector.broadcast %5 : vector<1x32xf32> to vector<16x32xf32>
    %37 = arith.mulf %35, %36 : vector<16x32xf32>
    %38 = vector.broadcast %2 : vector<16x1xf32> to vector<16x32xf32>
    %39 = vector.broadcast %6 : vector<1x32xf32> to vector<16x32xf32>
    %40 = arith.mulf %38, %39 : vector<16x32xf32>
    %41 = arith.addf %37, %40 : vector<16x32xf32>
    %42 = vector.broadcast %7 : vector<1x32xf32> to vector<16x32xf32>
    %43 = arith.addf %41, %42 : vector<16x32xf32>
    %44 = vector.broadcast %3 : vector<8x1xf32> to vector<8x32xf32>
    %45 = vector.broadcast %9 : vector<1x32xf32> to vector<8x32xf32>
    %46 = arith.mulf %44, %45 : vector<8x32xf32>
    %47 = vector.broadcast %10 : vector<1x32xf32> to vector<8x32xf32>
    %48 = arith.addf %46, %47 : vector<8x32xf32>
    %49 = vector.shape_cast %8 : vector<1x32xf32> to vector<1x32xf32>
    %50 = vector.broadcast %49 : vector<1x32xf32> to vector<16x32xf32>
    %51 = vector.shape_cast %11 : vector<1x32xf32> to vector<1x32xf32>
    %52 = vector.broadcast %51 : vector<1x32xf32> to vector<8x32xf32>
    %cst_27 = arith.constant dense<0.000000e+00> : vector<16x32xf32>
    %53 = tpu.matmul %24, %4, %cst_27 {dimension_numbers = #tpu.dot_dimension_numbers<[1], [0], [0], [1], [0, 0, 1, 1], [], []>} : vector<16x8xf32>, vector<8x32xf32>, vector<16x32xf32> -> vector<16x32xf32>
    %cst_28 = arith.constant dense<0.000000e+00> : vector<16x32xf32>
    %54 = tpu.matmul %53, %14, %cst_28 {dimension_numbers = #tpu.dot_dimension_numbers<[1], [0], [0], [1], [0, 0, 1, 1], [], []>} : vector<16x32xf32>, vector<32x32xf32>, vector<16x32xf32> -> vector<16x32xf32>
    %55 = arith.addf %54, %43 : vector<16x32xf32>
    %cst_29 = arith.constant 0.000000e+00 : f32
    %56 = vector.broadcast %cst_29 : f32 to vector<16x32xf32>
    %57 = arith.maximumf %55, %56 : vector<16x32xf32>
    %cst_30 = arith.constant dense<0.000000e+00> : vector<16x32xf32>
    %58 = tpu.matmul %57, %15, %cst_30 {dimension_numbers = #tpu.dot_dimension_numbers<[1], [0], [0], [1], [0, 0, 1, 1], [], []>} : vector<16x32xf32>, vector<32x32xf32>, vector<16x32xf32> -> vector<16x32xf32>
    %59 = arith.addf %58, %50 : vector<16x32xf32>
    %cst_31 = arith.constant 0.000000e+00 : f32
    %60 = vector.broadcast %cst_31 : f32 to vector<16x32xf32>
    %61 = arith.maximumf %59, %60 : vector<16x32xf32>
    %62 = vector.shape_cast %61 : vector<16x32xf32> to vector<1x16x32xf32>
    %cst_32 = arith.constant -1.000000e+30 : f32
    %63 = vector.shape_cast %28 : vector<8x16x1xi1> to vector<8x16x1xi1>
    %64 = vector.broadcast %63 : vector<8x16x1xi1> to vector<8x16x32xi1>
    %65 = vector.shape_cast %62 : vector<1x16x32xf32> to vector<1x16x32xf32>
    %66 = vector.broadcast %65 : vector<1x16x32xf32> to vector<8x16x32xf32>
    %67 = vector.broadcast %cst_32 : f32 to vector<8x16x32xf32>
    %68 = arith.select %64, %66, %67 : vector<8x16x32xi1>, vector<8x16x32xf32>
    %cst_33 = arith.constant dense<0xFF800000> : vector<8x32xf32>
    %69 = vector.multi_reduction <maximumf>, %68, %cst_33 [1] : vector<8x16x32xf32> to vector<8x32xf32>
    %cst_34 = arith.constant 0.000000e+00 : f32
    %70 = vector.shape_cast %33 : vector<8x1xi1> to vector<8x1xi1>
    %71 = vector.broadcast %70 : vector<8x1xi1> to vector<8x32xi1>
    %72 = vector.broadcast %cst_34 : f32 to vector<8x32xf32>
    %73 = arith.select %71, %69, %72 : vector<8x32xi1>, vector<8x32xf32>
    %74 = tpu.concatenate %4, %73 in 1 : vector<8x32xf32>, vector<8x32xf32> -> vector<8x64xf32>
    %cst_35 = arith.constant dense<0.000000e+00> : vector<8x32xf32>
    %75 = tpu.matmul %74, %16, %cst_35 {dimension_numbers = #tpu.dot_dimension_numbers<[1], [0], [0], [1], [0, 0, 1, 1], [], []>} : vector<8x64xf32>, vector<64x32xf32>, vector<8x32xf32> -> vector<8x32xf32>
    %76 = arith.addf %75, %48 : vector<8x32xf32>
    %cst_36 = arith.constant 0.000000e+00 : f32
    %77 = vector.broadcast %cst_36 : f32 to vector<8x32xf32>
    %78 = arith.maximumf %76, %77 : vector<8x32xf32>
    %cst_37 = arith.constant dense<0.000000e+00> : vector<8x32xf32>
    %79 = tpu.matmul %78, %17, %cst_37 {dimension_numbers = #tpu.dot_dimension_numbers<[1], [0], [0], [1], [0, 0, 1, 1], [], []>} : vector<8x32xf32>, vector<32x32xf32>, vector<8x32xf32> -> vector<8x32xf32>
    %80 = arith.addf %79, %52 : vector<8x32xf32>
    %cst_38 = arith.constant 0.000000e+00 : f32
    %81 = vector.broadcast %cst_38 : f32 to vector<8x32xf32>
    %82 = arith.maximumf %80, %81 : vector<8x32xf32>
    %cst_39 = arith.constant dense<0.000000e+00> : vector<16x32xf32>
    %83 = tpu.matmul %24, %82, %cst_39 {dimension_numbers = #tpu.dot_dimension_numbers<[1], [0], [0], [1], [0, 0, 1, 1], [], []>} : vector<16x8xf32>, vector<8x32xf32>, vector<16x32xf32> -> vector<16x32xf32>
    %cst_40 = arith.constant dense<0.000000e+00> : vector<16x32xf32>
    %84 = tpu.matmul %83, %14, %cst_40 {dimension_numbers = #tpu.dot_dimension_numbers<[1], [0], [0], [1], [0, 0, 1, 1], [], []>} : vector<16x32xf32>, vector<32x32xf32>, vector<16x32xf32> -> vector<16x32xf32>
    %85 = arith.addf %84, %43 : vector<16x32xf32>
    %cst_41 = arith.constant 0.000000e+00 : f32
    %86 = vector.broadcast %cst_41 : f32 to vector<16x32xf32>
    %87 = arith.maximumf %85, %86 : vector<16x32xf32>
    %cst_42 = arith.constant dense<0.000000e+00> : vector<16x32xf32>
    %88 = tpu.matmul %87, %15, %cst_42 {dimension_numbers = #tpu.dot_dimension_numbers<[1], [0], [0], [1], [0, 0, 1, 1], [], []>} : vector<16x32xf32>, vector<32x32xf32>, vector<16x32xf32> -> vector<16x32xf32>
    %89 = arith.addf %88, %50 : vector<16x32xf32>
    %cst_43 = arith.constant 0.000000e+00 : f32
    %90 = vector.broadcast %cst_43 : f32 to vector<16x32xf32>
    %91 = arith.maximumf %89, %90 : vector<16x32xf32>
    %92 = vector.shape_cast %91 : vector<16x32xf32> to vector<1x16x32xf32>
    %cst_44 = arith.constant -1.000000e+30 : f32
    %93 = vector.shape_cast %28 : vector<8x16x1xi1> to vector<8x16x1xi1>
    %94 = vector.broadcast %93 : vector<8x16x1xi1> to vector<8x16x32xi1>
    %95 = vector.shape_cast %92 : vector<1x16x32xf32> to vector<1x16x32xf32>
    %96 = vector.broadcast %95 : vector<1x16x32xf32> to vector<8x16x32xf32>
    %97 = vector.broadcast %cst_44 : f32 to vector<8x16x32xf32>
    %98 = arith.select %94, %96, %97 : vector<8x16x32xi1>, vector<8x16x32xf32>
    %cst_45 = arith.constant dense<0xFF800000> : vector<8x32xf32>
    %99 = vector.multi_reduction <maximumf>, %98, %cst_45 [1] : vector<8x16x32xf32> to vector<8x32xf32>
    %cst_46 = arith.constant 0.000000e+00 : f32
    %100 = vector.shape_cast %33 : vector<8x1xi1> to vector<8x1xi1>
    %101 = vector.broadcast %100 : vector<8x1xi1> to vector<8x32xi1>
    %102 = vector.broadcast %cst_46 : f32 to vector<8x32xf32>
    %103 = arith.select %101, %99, %102 : vector<8x32xi1>, vector<8x32xf32>
    %104 = tpu.concatenate %82, %103 in 1 : vector<8x32xf32>, vector<8x32xf32> -> vector<8x64xf32>
    %cst_47 = arith.constant dense<0.000000e+00> : vector<8x32xf32>
    %105 = tpu.matmul %104, %16, %cst_47 {dimension_numbers = #tpu.dot_dimension_numbers<[1], [0], [0], [1], [0, 0, 1, 1], [], []>} : vector<8x64xf32>, vector<64x32xf32>, vector<8x32xf32> -> vector<8x32xf32>
    %106 = arith.addf %105, %48 : vector<8x32xf32>
    %cst_48 = arith.constant 0.000000e+00 : f32
    %107 = vector.broadcast %cst_48 : f32 to vector<8x32xf32>
    %108 = arith.maximumf %106, %107 : vector<8x32xf32>
    %cst_49 = arith.constant dense<0.000000e+00> : vector<8x32xf32>
    %109 = tpu.matmul %108, %17, %cst_49 {dimension_numbers = #tpu.dot_dimension_numbers<[1], [0], [0], [1], [0, 0, 1, 1], [], []>} : vector<8x32xf32>, vector<32x32xf32>, vector<8x32xf32> -> vector<8x32xf32>
    %110 = arith.addf %109, %52 : vector<8x32xf32>
    %cst_50 = arith.constant 0.000000e+00 : f32
    %111 = vector.broadcast %cst_50 : f32 to vector<8x32xf32>
    %112 = arith.maximumf %110, %111 : vector<8x32xf32>
    %cst_51 = arith.constant dense<0.000000e+00> : vector<16x32xf32>
    %113 = tpu.matmul %24, %112, %cst_51 {dimension_numbers = #tpu.dot_dimension_numbers<[1], [0], [0], [1], [0, 0, 1, 1], [], []>} : vector<16x8xf32>, vector<8x32xf32>, vector<16x32xf32> -> vector<16x32xf32>
    %cst_52 = arith.constant dense<0.000000e+00> : vector<16x32xf32>
    %114 = tpu.matmul %113, %14, %cst_52 {dimension_numbers = #tpu.dot_dimension_numbers<[1], [0], [0], [1], [0, 0, 1, 1], [], []>} : vector<16x32xf32>, vector<32x32xf32>, vector<16x32xf32> -> vector<16x32xf32>
    %115 = arith.addf %114, %43 : vector<16x32xf32>
    %cst_53 = arith.constant 0.000000e+00 : f32
    %116 = vector.broadcast %cst_53 : f32 to vector<16x32xf32>
    %117 = arith.maximumf %115, %116 : vector<16x32xf32>
    %cst_54 = arith.constant dense<0.000000e+00> : vector<16x32xf32>
    %118 = tpu.matmul %117, %15, %cst_54 {dimension_numbers = #tpu.dot_dimension_numbers<[1], [0], [0], [1], [0, 0, 1, 1], [], []>} : vector<16x32xf32>, vector<32x32xf32>, vector<16x32xf32> -> vector<16x32xf32>
    %119 = arith.addf %118, %50 : vector<16x32xf32>
    %cst_55 = arith.constant 0.000000e+00 : f32
    %120 = vector.broadcast %cst_55 : f32 to vector<16x32xf32>
    %121 = arith.maximumf %119, %120 : vector<16x32xf32>
    %122 = vector.shape_cast %121 : vector<16x32xf32> to vector<1x16x32xf32>
    %cst_56 = arith.constant -1.000000e+30 : f32
    %123 = vector.shape_cast %28 : vector<8x16x1xi1> to vector<8x16x1xi1>
    %124 = vector.broadcast %123 : vector<8x16x1xi1> to vector<8x16x32xi1>
    %125 = vector.shape_cast %122 : vector<1x16x32xf32> to vector<1x16x32xf32>
    %126 = vector.broadcast %125 : vector<1x16x32xf32> to vector<8x16x32xf32>
    %127 = vector.broadcast %cst_56 : f32 to vector<8x16x32xf32>
    %128 = arith.select %124, %126, %127 : vector<8x16x32xi1>, vector<8x16x32xf32>
    %cst_57 = arith.constant dense<0xFF800000> : vector<8x32xf32>
    %129 = vector.multi_reduction <maximumf>, %128, %cst_57 [1] : vector<8x16x32xf32> to vector<8x32xf32>
    %cst_58 = arith.constant 0.000000e+00 : f32
    %130 = vector.shape_cast %33 : vector<8x1xi1> to vector<8x1xi1>
    %131 = vector.broadcast %130 : vector<8x1xi1> to vector<8x32xi1>
    %132 = vector.broadcast %cst_58 : f32 to vector<8x32xf32>
    %133 = arith.select %131, %129, %132 : vector<8x32xi1>, vector<8x32xf32>
    %134 = tpu.concatenate %112, %133 in 1 : vector<8x32xf32>, vector<8x32xf32> -> vector<8x64xf32>
    %cst_59 = arith.constant dense<0.000000e+00> : vector<8x32xf32>
    %135 = tpu.matmul %134, %16, %cst_59 {dimension_numbers = #tpu.dot_dimension_numbers<[1], [0], [0], [1], [0, 0, 1, 1], [], []>} : vector<8x64xf32>, vector<64x32xf32>, vector<8x32xf32> -> vector<8x32xf32>
    %136 = arith.addf %135, %48 : vector<8x32xf32>
    %cst_60 = arith.constant 0.000000e+00 : f32
    %137 = vector.broadcast %cst_60 : f32 to vector<8x32xf32>
    %138 = arith.maximumf %136, %137 : vector<8x32xf32>
    %cst_61 = arith.constant dense<0.000000e+00> : vector<8x32xf32>
    %139 = tpu.matmul %138, %17, %cst_61 {dimension_numbers = #tpu.dot_dimension_numbers<[1], [0], [0], [1], [0, 0, 1, 1], [], []>} : vector<8x32xf32>, vector<32x32xf32>, vector<8x32xf32> -> vector<8x32xf32>
    %140 = arith.addf %139, %52 : vector<8x32xf32>
    %cst_62 = arith.constant 0.000000e+00 : f32
    %141 = vector.broadcast %cst_62 : f32 to vector<8x32xf32>
    %142 = arith.maximumf %140, %141 : vector<8x32xf32>
    %cst_63 = arith.constant dense<0.000000e+00> : vector<8x32xf32>
    %143 = tpu.matmul %142, %18, %cst_63 {dimension_numbers = #tpu.dot_dimension_numbers<[1], [0], [0], [1], [0, 0, 1, 1], [], []>} : vector<8x32xf32>, vector<32x32xf32>, vector<8x32xf32> -> vector<8x32xf32>
    %144 = vector.broadcast %12 : vector<1x32xf32> to vector<8x32xf32>
    %145 = arith.addf %143, %144 : vector<8x32xf32>
    %cst_64 = arith.constant 0.000000e+00 : f32
    %146 = vector.broadcast %cst_64 : f32 to vector<8x32xf32>
    %147 = arith.maximumf %145, %146 : vector<8x32xf32>
    %cst_65 = arith.constant dense<0.000000e+00> : vector<8x32xf32>
    %148 = tpu.matmul %147, %19, %cst_65 {dimension_numbers = #tpu.dot_dimension_numbers<[1], [0], [0], [1], [0, 0, 1, 1], [], []>} : vector<8x32xf32>, vector<32x32xf32>, vector<8x32xf32> -> vector<8x32xf32>
    %149 = vector.broadcast %13 : vector<1x32xf32> to vector<8x32xf32>
    %150 = arith.addf %148, %149 : vector<8x32xf32>
    %151 = vector.extract_strided_slice %150 {offsets = [0, 0], sizes = [8, 1], strides = [1, 1]} : vector<8x32xf32> to vector<8x1xf32>
    %152 = arith.negf %151 : vector<8x1xf32>
    %153 = math.exp %152 : vector<8x1xf32>
    %cst_66 = arith.constant 1.000000e+00 : f32
    %154 = vector.broadcast %cst_66 : f32 to vector<8x1xf32>
    %155 = arith.addf %154, %153 : vector<8x1xf32>
    %156 = arith.divf %154, %155 : vector<8x1xf32>
    %c0_67 = arith.constant 0 : index
    %c0_68 = arith.constant 0 : index
    %157 = vector.load %arg5[%c0_67, %c0_68] : memref<8x1xf32, #tpu.memory_space<vmem>>, vector<8x1xf32>
    tpu.vector_store %arg5[%c0_67, %c0_68], %156 {strides = array<i32>} : memref<8x1xf32, #tpu.memory_space<vmem>>, vector<8x1xf32>,
    return
  }
}

</mosaic_0001>

<bundles_post_ra>
// kernel: tpu_custom_call.1
= control target key start
LH: loop header
LB: loop body
LE: loop exit
PB: predicated region body
PF: predicated region fallthrough
CT: control target
= control target key end

     0   :  { %v1280_v0 = vmov 0   ;;  %v63_v8 = vlaneseq  ;;  %vm2094_vm0 = vcmask 64512   ;;  %v1281_v11 = vmov 0.0   ;;  %s1283_s10 = smov 32   ;;  %s2046_s0 = inlined_call_operand.vmem [shape: s32[16,2], index: 0, kind: input, shape index: {}]   ;;  %s2047_s4 = inlined_call_operand.vmem [shape: f32[240,32], index: 4, kind: input, shape index: {}]   ;;  %s2048_s2 = inlined_call_operand.vmem [shape: f32[8,1], index: 2, kind: input, shape index: {}]   ;;  %s2049_s3 = inlined_call_operand.vmem [shape: f32[8,32], index: 3, kind: input, shape index: {}]   ;;  %s2050_s1 = inlined_call_operand.vmem [shape: f32[16,1], index: 1, kind: input, shape index: {}]   ;;  %s2051_s5 = inlined_call_operand.vmem [shape: f32[8,1], index: 5, kind: output, shape index: {}]  }
   0x1   :  { %1260 = vset.pattern.permute.xlu0 %v1280_v0  ;;  %v1318_v1 = vld [vmem:[%s2046_s0] sm:$0xff]  ;;  %1261 = vset.pattern.permute.xlu1 %v1280_v0  ;;  %v1326_v2 = vld [vmem:[%s2046_s0 + $0x8] sm:$0xff]  ;;  %v1355_v7 = vld [vmem:[%s2047_s4 + $0x18] sm:$0xff]  ;;  %vm125_vm5 = vcmask 15368   ;;  %v1282_v17 = vmov 1   ;;  %vm301_vm7 = vcmask 261120  }
   0x2   :  { %66 = vperm.xlu0 %1260, %v1318_v1   ;;  %1262 = vset.pattern.permute.xlu2 %v1280_v0  ;;  %v1332_v3 = vld [vmem:[%s2048_s2] sm:$0xff]  ;;  %v1344_v5 = vld [vmem:[%s2047_s4 + $0x28] sm:$0xff]  ;;  %v64_v9 = vand.u32 127, %v63_v8  ;;  %v1376_v15 = vld [vmem:[%s2047_s4 + $0x10] sm:$0xff]  ;;  %vm78_vm3 = vcmp.eq.s32.totalorder %v1326_v2, 0  ;;  %vm77_vm4 = vcmp.eq.s32.totalorder %v1318_v1, 0 }
   0x3   :  { %v1337_v4 = vld [vmem:[%s2049_s3] sm:$0xff]  ;;  %228 = vmatpush.msra.mxu0 %v1332_v3  ;;  %320 = vmatpush.msra.mxu2 %v1344_v5  ;;  %v1212_v16 = vsel %vm78_vm3, 1.0, %v1281_v11  ;;  %v93_v18 = vsel %vm77_vm4, 1, %v1280_v0  ;;  %v1211_v19 = vsel %vm77_vm4, 1.0, %v1281_v11  ;;  %vm82_vm6 = vcmp.eq.s32.totalorder %v1326_v2, 2  ;;  %v23_v30 = vld [vmem:[%s2050_s1 + $0x8] sm:$0xff] }
   0x4   :  { %293 = vmatpush.msra.mxu1 %v1337_v4  ;;  %v1349_v6 = vld [vmem:[%s2047_s4 + $0x20] sm:$0xff]  ;;  %v127_v20 = vsel %vm125_vm5, %v1212_v16, 0.0  ;;  %v126_v21 = vsel %vm125_vm5, %v1211_v19, 0.0  ;;  %v98_v23 = vsel %vm82_vm6, 1, %v1280_v0  ;;  %vm85_vm8 = vcmp.eq.s32.totalorder %v1318_v1, 4 }
   0x5   :  { %321 = vmatpush.msra.mxu2 %v1349_v6  ;;  %v1388_v22 = vadd.f32 %v127_v20, %v126_v21  ;;  %v101_v26 = vsel %vm85_vm8, 1, %v1280_v0  ;;  %v22_v27 = vld [vmem:[%s2050_s1] sm:$0xff]  ;;  %v94_v31 = vsel %vm78_vm3, 1, %v1280_v0  ;;  %vm80_vm9 = vcmp.eq.s32.totalorder %v1326_v2, 1 }
   0x6   :  { %vm79_vm10 = vcmp.eq.s32.totalorder %v1318_v1, 1  ;;  %v96_v32 = vsel %vm80_vm9, 1, %v1280_v0  ;;  %vm83_vm11 = vcmp.eq.s32.totalorder %v1318_v1, 3  ;;  %vm86_vm12 = vcmp.eq.s32.totalorder %v1326_v2, 4 }
   0x7   :  { %322 = vmatpush.msra.mxu2 %v1355_v7  ;;  %v95_v33 = vsel %vm79_vm10, 1, %v1280_v0  ;;  %v99_v34 = vsel %vm83_vm11, 1, %v1280_v0  ;;  %v102_v35 = vsel %vm86_vm12, 1, %v1280_v0  ;;  %v1214_v36 = vsel %vm80_vm9, 1.0, %v1281_v11 }
   0x8   :  { %v1213_v37 = vsel %vm79_vm10, 1.0, %v1281_v11  ;;  %v136_v38 = vsel %vm125_vm5, %v1214_v36, 0.0  ;;  %vm88_vm13 = vcmp.eq.s32.totalorder %v1326_v2, 5  ;;  %v1216_v41 = vsel %vm82_vm6, 1.0, %v1281_v11 }
   0x9   :  { %323 = vmatpush.msra.mxu2 %v1376_v15  ;;  %v135_v39 = vsel %vm125_vm5, %v1213_v37, 0.0  ;;  %v104_v42 = vsel %vm88_vm13, 1, %v1280_v0  ;;  %v1219_v44 = vsel %vm85_vm8, 1.0, %v1281_v11  ;;  %v1220_v45 = vsel %vm86_vm12, 1.0, %v1281_v11 }
   0xa   :  { %69 = vperm.xlu0 %1260, %v1326_v2   ;;  %v137_v40 = vadd.f32 %v136_v38, %v135_v39  ;;  %vm89_vm14 = vcmp.eq.s32.totalorder %v1318_v1, 6  ;;  %vm81_vm15 = vcmp.eq.s32.totalorder %v1318_v1, 2  ;;  %v145_v46 = vsel %vm125_vm5, %v1216_v41, 0.0 }
   0xb   :  { %v105_v47 = vsel %vm89_vm14, 1, %v1280_v0  ;;  %v97_v48 = vsel %vm81_vm15, 1, %v1280_v0  ;;  %v1215_v49 = vsel %vm81_vm15, 1.0, %v1281_v11  ;;  %v162_v50 = vsel %vm125_vm5, %v1219_v44, 0.0 }
   0xc   :  { %v138_v43 = vrot.slane %v137_v40, 4  ;;  %v163_v51 = vsel %vm125_vm5, %v1220_v45, 0.0  ;;  %v144_v52 = vsel %vm125_vm5, %v1215_v49, 0.0  ;;  %v1222_v63 = vsel %vm88_vm13, 1.0, %v1281_v11 }
   0xd   :  { %v146_v54 = vadd.f32 %v145_v46, %v144_v52  ;;  %v164_v56 = vadd.f32 %v163_v51, %v162_v50  ;;  %vm92_vm3 = vcmp.eq.s32.totalorder %v1326_v2, 7  ;;  %vm84_vm4 = vcmp.eq.s32.totalorder %v1326_v2, 3 }
   0xe   :  { %v139_v53 = vadd.f32 %v138_v43, %v137_v40  ;;  %v108_v16 = vsel %vm92_vm3, 1, %v1280_v0  ;;  %v100_v21 = vsel %vm84_vm4, 1, %v1280_v0  ;;  %v1218_v37 = vsel %vm84_vm4, 1.0, %v1281_v11 }
   0xf   :  { %v147_v57 = vrot.slane %v146_v54, 4  ;;  %v165_v62 = vrot.slane %v164_v56, 4  ;;  %v154_v46 = vsel %vm125_vm5, %v1218_v37, 0.0  ;;  %vm90_vm10 = vcmp.eq.s32.totalorder %v1326_v2, 6 }
  0x10   :  { %v140_v55 = vrot.slane %v139_v53, 2 }
  0x11   :  { %v148_v61 = vadd.f32 %v147_v57, %v146_v54  ;;  %v1223_v54 = vsel %vm89_vm14, 1.0, %v1281_v11 }
  0x12   :  { %1263 = vset.pattern.permute.xlu0 %v1282_v17  ;;  %v141_v59 = vadd.f32 %v140_v55, %v139_v53 }
  0x13   :  { %365 = vperm.xlu0 %1263, %v93_v18   ;;  %v172_v18 = vsel %vm125_vm5, %v1222_v63, 0.0 }
  0x14   :  { %v142_v60 = vrot.slane %v141_v59, 1 }
  0x16   :  { %v143_v8 = vadd.f32 %v142_v60, %v141_v59  ;;  %v1224_v59 = vsel %vm90_vm10, 1.0, %v1281_v11 }
  0x17   :  { %v181_v2 = vsel %vm125_vm5, %v1224_v59, 0.0 }
  0x18   :  { %vm199_vm6 = vcmp.gt.f32.partialorder %v143_v8, 0.0  ;;  %v1504_v8 = vld [vmem:[%s2047_s4 + $0x40] sm:$0xff] }
  0x1b   :  { %380 = vperm.xlu0 %1263, %v98_v23  }
  0x23   :  { %389 = vperm.xlu0 %1263, %v101_v26  }
  0x2b   :  { %398 = vperm.xlu0 %1263, %v104_v42   ;;  %v129_v42 = vrot.slane %v1388_v22, 4 }
  0x2d   :  { %v130_v53 = vadd.f32 %v129_v42, %v1388_v22  ;;  %v106_v22 = vsel %vm90_vm10, 1, %v1280_v0  ;;  %v1269_v42 = vld [vmem:[%s2047_s4 + $0x2] ss:$0 sm:$0xff] }
  0x74   :  { %v67_v10 = vpop.permute.xlu0 %66 }
  0x75   :  { %vm71_vm1 = vcmp.eq.s32.totalorder %v64_v9, %v67_v10 }
  0x76   :  { %v1360_v12 = vsel %vm71_vm1, 1.0, %v1281_v11  ;;  %vm91_vm1 = vcmp.eq.s32.totalorder %v1318_v1, 7 }
  0x77   :  { %1227 = vmatmul.msk.f32.vlgmr.msra.gmra.mxu0 %vm2094_vm0, %v1360_v12  ;;  %1229 = vmatmul.msk.f32.vlgmr.msra.gmra.mxu1 %vm2094_vm0, %v1360_v12  ;;  %v107_v58 = vsel %vm91_vm1, 1, %v1280_v0 }
  0x78   :  { %407 = vperm.xlu0 %1263, %v107_v58  }
  0x7c   :  { %v70_v13 = vpop.permute.xlu0 %69 }
  0x7d   :  { %vm72_vm2 = vcmp.eq.s32.totalorder %v64_v9, %v70_v13  ;;  %v149_v9 = vrot.slane %v148_v61, 2  ;;  %v1225_v13 = vsel %vm91_vm1, 1.0, %v1281_v11 }
  0x7e   :  { %v1367_v14 = vsel %vm72_vm2, 1.0, %v1281_v11  ;;  %vm87_vm2 = vcmp.eq.s32.totalorder %v1318_v1, 5  ;;  %v189_v19 = vsel %vm125_vm5, %v1225_v13, 0.0  ;;  %v131_v1 = vrot.slane %v130_v53, 2 }
  0x7f   :  { %1228 = vmatmul.msk.f32.gmra.mxu0 %vm2094_vm0, %v1367_v14  ;;  %1230 = vmatmul.msk.f32.gmra.mxu1 %vm2094_vm0, %v1367_v14  ;;  %v1221_v10 = vsel %vm87_vm2, 1.0, %v1281_v11 }
  0x80   :  { %v171_v26 = vsel %vm125_vm5, %v1221_v10, 0.0  ;;  %v1511_v10 = vld [vmem:[%s2047_s4 + $0x38] sm:$0xff] }
  0xf4   :  { %v230_v24 = vpop.f32.mrf.mxu0  ;;  %v295_v25 = vpop.f32.mrf.mxu1 }
  0xf5   :  { %1231 = vmatmul.msk.f32.vlgmr.msra.gmra.mxu2 %vm301_vm7, %v295_v25  ;;  %238 = vperm.xlu1 %1261, %v230_v24   ;;  %v150_v24 = vadd.f32 %v149_v9, %v148_v61  ;;  %v517_v25 = vsel %vm199_vm6, 1, %v1280_v0  ;;  %v132_v61 = vadd.f32 %v131_v1, %v130_v53 }
  0xf6   :  { %528 = vperm.xlu0 %1263, %v517_v25  }
  0xfc   :  { %v233_v28 = vpop.f32.mrf.mxu0  ;;  %v298_v29 = vpop.f32.mrf.mxu1 }
  0xfd   :  { %251 = vperm.xlu1 %1261, %v22_v27   ;;  %1232 = vmatmul.msk.f32.gmra.mxu2 %vm301_vm7, %v298_v29  ;;  %v173_v29 = vadd.f32 %v172_v18, %v171_v26 }
  0xfe   :  { %243 = vperm.xlu2 %1262, %v233_v28   ;;  %v151_v28 = vrot.slane %v150_v24, 1 }
 0x105   :  { %1264 = vset.pattern.permute.xlu1 %v1282_v17 }
 0x106   :  { %256 = vperm.xlu2 %1262, %v23_v30   ;;  %368 = vperm.xlu1 %1264, %v94_v31   ;;  %v166_v30 = vadd.f32 %v165_v62, %v164_v56  ;;  %v152_v31 = vadd.f32 %v151_v28, %v150_v24  ;;  %v1492_v56 = vld [vmem:[%s2047_s4 + $0x48] sm:$0xff]  ;;  %v180_v62 = vsel %vm125_vm5, %v1223_v54, 0.0 }
 0x107   :  { %351 = vmatpush.msra.mxu3 %v1492_v56  ;;  %v182_v13 = vadd.f32 %v181_v2, %v180_v62 }
 0x108   :  { %vm200_vm8 = vcmp.gt.f32.partialorder %v152_v31, 0.0 }
 0x109   :  { %v518_v40 = vsel %vm200_vm8, 1, %v1280_v0  ;;  %352 = vmatpush.msra.mxu3 %v1504_v8 }
 0x10b   :  { %353 = vmatpush.msra.mxu3 %v1511_v10 }
 0x10e   :  { %374 = vperm.xlu1 %1264, %v96_v32   ;;  %1265 = vset.pattern.permute.xlu2 %v1282_v17  ;;  %v1226_v17 = vsel %vm92_vm3, 1.0, %v1281_v11  ;;  %v174_v32 = vrot.slane %v173_v29, 4 }
 0x10f   :  { %371 = vperm.xlu2 %1265, %v95_v33   ;;  %v190_v20 = vsel %vm125_vm5, %v1226_v17, 0.0  ;;  %v167_v33 = vrot.slane %v166_v30, 2 }
 0x110   :  { %v191_v23 = vadd.f32 %v190_v20, %v189_v19  ;;  %v175_v39 = vadd.f32 %v174_v32, %v173_v29 }
 0x111   :  { %v168_v38 = vadd.f32 %v167_v33, %v166_v30 }
 0x112   :  { %v192_v27 = vrot.slane %v191_v23, 4  ;;  %v176_v44 = vrot.slane %v175_v39, 2 }
 0x113   :  { %v169_v43 = vrot.slane %v168_v38, 1 }
 0x114   :  { %v193_v36 = vadd.f32 %v192_v27, %v191_v23  ;;  %v177_v49 = vadd.f32 %v176_v44, %v175_v39 }
 0x116   :  { %383 = vperm.xlu1 %1264, %v99_v34   ;;  %v1217_v34 = vsel %vm83_vm11, 1.0, %v1281_v11  ;;  %v194_v41 = vrot.slane %v193_v36, 2  ;;  %v178_v52 = vrot.slane %v177_v49, 1  ;;  %v133_v11 = vrot.slane %v132_v61, 1 }
 0x117   :  { %377 = vperm.xlu2 %1265, %v97_v48   ;;  %v153_v45 = vsel %vm125_vm5, %v1217_v34, 0.0  ;;  %v170_v48 = vadd.f32 %v169_v43, %v168_v38  ;;  %v1268_v34 = vld [vmem:[%s2047_s4 + $0x1] ss:$0 sm:$0xff] }
 0x118   :  { %v155_v51 = vadd.f32 %v154_v46, %v153_v45  ;;  %v179_v58 = vadd.f32 %v178_v52, %v177_v49  ;;  %v134_v17 = vadd.f32 %v133_v11, %v132_v61 }
 0x119   :  { %vm202_vm9 = vcmp.gt.f32.partialorder %v170_v48, 0.0 }
 0x11a   :  { %v520_v55 = vsel %vm202_vm9, 1, %v1280_v0  ;;  %v156_v60 = vrot.slane %v155_v51, 4  ;;  %vm203_vm11 = vcmp.gt.f32.partialorder %v179_v58, 0.0  ;;  %vm198_vm5 = vcmp.gt.f32.partialorder %v134_v17, 0.0 }
 0x11b   :  { %537 = vperm.xlu0 %1263, %v520_v55   ;;  %v521_v63 = vsel %vm203_vm11, 1, %v1280_v0  ;;  %v516_v20 = vsel %vm198_vm5, 1, %v1280_v0 }
 0x11c   :  { %v157_v18 = vadd.f32 %v156_v60, %v155_v51 }
 0x11e   :  { %392 = vperm.xlu1 %1264, %v102_v35   ;;  %v103_v35 = vsel %vm87_vm2, 1, %v1280_v0  ;;  %v158_v19 = vrot.slane %v157_v18, 2 }
 0x11f   :  { %386 = vperm.xlu2 %1265, %v100_v21   ;;  %v183_v21 = vrot.slane %v182_v13, 4 }
 0x120   :  { %v159_v23 = vadd.f32 %v158_v19, %v157_v18 }
 0x121   :  { %v184_v26 = vadd.f32 %v183_v21, %v182_v13 }
 0x122   :  { %v160_v24 = vrot.slane %v159_v23, 1 }
 0x123   :  { %v185_v27 = vrot.slane %v184_v26, 2 }
 0x124   :  { %v161_v25 = vadd.f32 %v160_v24, %v159_v23 }
 0x125   :  { %v186_v30 = vadd.f32 %v185_v27, %v184_v26  ;;  %v1608_v26 = vld [vmem:[%s2047_s4 + $0x88] sm:$0xff]  ;;  %v1613_v27 = vld [vmem:[%s2047_s4 + $0x80] sm:$0xff] }
 0x126   :  { %401 = vperm.xlu1 %1264, %v105_v47   ;;  %v195_v47 = vadd.f32 %v194_v41, %v193_v36  ;;  %vm201_vm13 = vcmp.gt.f32.partialorder %v161_v25, 0.0  ;;  %v1267_v36 = vld [vmem:[%s2047_s4] ss:$0 sm:$0xff]  ;;  %602 = vmatpush.msrb.mxu0 %v1608_v26 }
 0x127   :  { %395 = vperm.xlu2 %1265, %v103_v35   ;;  %v519_v28 = vsel %vm201_vm13, 1, %v1280_v0  ;;  %v187_v31 = vrot.slane %v186_v30, 1 }
 0x128   :  { %v196_v50 = vrot.slane %v195_v47, 1  ;;  %603 = vmatpush.msrb.mxu0 %v1613_v27 }
 0x129   :  { %v188_v33 = vadd.f32 %v187_v31, %v186_v30 }
 0x12a   :  { %v197_v57 = vadd.f32 %v196_v50, %v195_v47 }
 0x12b   :  { %vm204_vm14 = vcmp.gt.f32.partialorder %v188_v33, 0.0 }
 0x12c   :  { %vm205_vm12 = vcmp.gt.f32.partialorder %v197_v57, 0.0  ;;  %v522_v35 = vsel %vm204_vm14, 1, %v1280_v0 }
 0x12d   :  { %v523_v9 = vsel %vm205_vm12, 1, %v1280_v0 }
 0x12e   :  { %410 = vperm.xlu1 %1264, %v108_v16   ;;  %v1517_v16 = vld [vmem:[%s2047_s4 + $0x30] sm:$0xff]  ;;  %546 = vperm.xlu0 %1263, %v523_v9  }
 0x12f   :  { %404 = vperm.xlu2 %1265, %v106_v22   ;;  %354 = vmatpush.msra.mxu3 %v1517_v16 }
 0x131   :  { %680 = vmatpush.msrb.mxu3 %v1344_v5 }
 0x133   :  { %681 = vmatpush.msrb.mxu3 %v1349_v6 }
 0x135   :  { %682 = vmatpush.msrb.mxu3 %v1355_v7 }
 0x136   :  { %531 = vperm.xlu1 %1264, %v518_v40  }
 0x137   :  { %525 = vperm.xlu2 %1265, %v516_v20   ;;  %683 = vmatpush.msrb.mxu3 %v1376_v15 }
 0x13e   :  { %540 = vperm.xlu1 %1264, %v521_v63   ;;  %v1573_v63 = vld [vmem:[%s2047_s4 + $0x3] ss:$0 sm:$0xff] }
 0x13f   :  { %534 = vperm.xlu2 %1265, %v519_v28  }
 0x147   :  { %543 = vperm.xlu2 %1265, %v522_v35  }
 0x14f   :  { %1266 = vset.pattern.permute.xlu2 %v1280_v0 }
 0x150   :  { %269 = vperm.xlu2 %1266, %v1332_v3   ;;  %v1550_v3 = vpop.permute.xlu0 %365 }
 0x151   :  { %vm2096_vm15 = vcmp.eq.s32.totalorder %v1550_v3, 1 }
 0x158   :  { %v244_v32 = vpop.permute.xlu2 %243  ;;  %v1556_v58 = vpop.permute.xlu0 %380 }
 0x159   :  { %v248_v46 = vmul.f32 %v1267_v36, %v244_v32  ;;  %2104 = vst [vmem:[#allocation4_spill] sm:$0xff] %v1556_v58  ;;  %vm2063_vm4 = vcmp.eq.s32.totalorder %v1556_v58, 1 }
 0x160   :  { %v257_v41 = vpop.permute.xlu2 %256  ;;  %v1562_v1 = vpop.permute.xlu0 %389 }
 0x161   :  { %v261_v43 = vmul.f32 %v1268_v34, %v257_v41  ;;  %2106 = vst [vmem:[#allocation6_spill] sm:$0xff] %v1562_v1  ;;  %vm2052_vm9 = vcmp.eq.s32.totalorder %v1562_v1, 1 }
 0x163   :  { %v263_v48 = vadd.f32 %v261_v43, %v248_v46  ;;  %v1652_v46 = vld [vmem:[%s2047_s4 + $0x68] sm:$0xff] }
 0x165   :  { %v1542_v50 = vadd.f32 %v1269_v42, %v263_v48 }
 0x167   :  { %v239_v29 = vpop.permute.xlu1 %238 }
 0x168   :  { %v247_v39 = vmul.f32 %v1267_v36, %v239_v29  ;;  %v1568_v62 = vpop.permute.xlu0 %398 }
 0x169   :  { %v1548_v0 = vpop.permute.xlu2 %371  ;;  %2109 = vst [vmem:[#allocation9_spill] sm:$0xff] %v1568_v62  ;;  %vm2056_vm14 = vcmp.eq.s32.totalorder %v1568_v62, 1 }
 0x16a   :  { %vm2097_vm2 = vcmp.eq.s32.totalorder %v1548_v0, 1 }
 0x16f   :  { %v252_v37 = vpop.permute.xlu1 %251 }
 0x170   :  { %v260_v38 = vmul.f32 %v1268_v34, %v252_v37  ;;  %v1581_v17 = vpop.permute.xlu0 %407  ;;  %v1632_v34 = vld [vmem:[%s2047_s4 + $0x78] sm:$0xff] }
 0x171   :  { %v1554_v57 = vpop.permute.xlu2 %377  ;;  %2112 = vst [vmem:[#allocation12_spill] sm:$0xff] %v1581_v17  ;;  %vm2086_vm13 = vcmp.eq.s32.totalorder %v1581_v17, 1  ;;  %604 = vmatpush.msrb.mxu0 %v1632_v34 }
 0x172   :  { %v262_v40 = vadd.f32 %v260_v38, %v247_v39  ;;  %vm2099_vm6 = vcmp.eq.s32.totalorder %v1554_v57, 1 }
 0x174   :  { %v1536_v44 = vadd.f32 %v1269_v42, %v262_v40 }
 0x178   :  { %v325_v45 = vpop.f32.mrf.mxu2  ;;  %v1546_v54 = vpop.permute.xlu1 %368 }
 0x179   :  { %v326_v47 = vadd.f32 %v325_v45, %v1536_v44  ;;  %2102 = vst [vmem:[#allocation2_spill] sm:$0xff] %v1546_v54  ;;  %v1560_v59 = vpop.permute.xlu2 %386  ;;  %vm2085_vm1 = vcmp.eq.s32.totalorder %v1546_v54, 1  ;;  %v1647_v45 = vld [vmem:[%s2047_s4 + $0x70] sm:$0xff] }
 0x17a   :  { %2105 = vst [vmem:[#allocation5_spill] sm:$0xff] %v1560_v59  ;;  %vm2058_vm11 = vcmp.eq.s32.totalorder %v1560_v59, 1  ;;  %605 = vmatpush.msrb.mxu0 %v1647_v45 }
 0x17b   :  { %v331_v49 = vmax.f32 %v326_v47, 0.0  ;;  %v1654_v47 = vpop.permute.xlu0 %528 }
 0x17c   :  { %606 = vmatpush.msrb.mxu0 %v1652_v46 }
 0x17d   :  { %1233 = vmatmul.msk.f32.vlgmr.msra.gmra.mxu3 %vm301_vm7, %v331_v49 }
 0x180   :  { %v328_v51 = vpop.f32.mrf.mxu2  ;;  %v1552_v55 = vpop.permute.xlu1 %374 }
 0x181   :  { %v329_v52 = vadd.f32 %v328_v51, %v1542_v50  ;;  %2103 = vst [vmem:[#allocation3_spill] sm:$0xff] %v1552_v55  ;;  %v1566_v61 = vpop.permute.xlu2 %395  ;;  %vm2084_vm3 = vcmp.eq.s32.totalorder %v1552_v55, 1 }
 0x182   :  { %2108 = vst [vmem:[#allocation8_spill] sm:$0xff] %v1566_v61  ;;  %vm2098_vm12 = vcmp.eq.s32.totalorder %v1566_v61, 1 }
 0x183   :  { %v332_v53 = vmax.f32 %v329_v52, 0.0 }
 0x185   :  { %1234 = vmatmul.msk.f32.gmra.mxu3 %vm301_vm7, %v332_v53 }
 0x188   :  { %v1558_v22 = vpop.permute.xlu1 %383 }
 0x189   :  { %v1578_v13 = vpop.permute.xlu2 %404  ;;  %vm2053_vm8 = vcmp.eq.s32.totalorder %v1558_v22, 1 }
 0x18a   :  { %2111 = vst [vmem:[#allocation11_spill] sm:$0xff] %v1578_v13 }
 0x190   :  { %v1564_v60 = vpop.permute.xlu1 %392 }
 0x191   :  { %2107 = vst [vmem:[#allocation7_spill] sm:$0xff] %v1564_v60  ;;  %vm2057_vm10 = vcmp.eq.s32.totalorder %v1564_v60, 1  ;;  %v1638_v39 = vpop.permute.xlu2 %525 }
 0x198   :  { %v1575_v2 = vpop.permute.xlu1 %401 }
 0x199   :  { %2110 = vst [vmem:[#allocation10_spill] sm:$0xff] %v1575_v2  ;;  %vm2091_vm5 = vcmp.eq.s32.totalorder %v1575_v2, 1 }
 0x1a0   :  { %v1615_v28 = vpop.permute.xlu1 %410 }
 0x1a1   :  { %2113 = vst [vmem:[#allocation13_spill] sm:$0xff] %v1615_v28 }
 0x200   :  { %v356_v11 = vpop.f32.mrf.mxu3 }
 0x201   :  { %v357_v9 = vadd.f32 %v1573_v63, %v356_v11 }
 0x203   :  { %v362_v18 = vmax.f32 %v357_v9, 0.0 }
 0x205   :  { %v428_v19 = vsel %vm2096_vm15, %v362_v18, -1e+30  ;;  %v430_v20 = vsel %vm2097_vm2, %v362_v18, -1e+30  ;;  %v432_v21 = vsel %vm2099_vm6, %v362_v18, -1e+30 }
 0x206   :  { %v434_v24 = vsel %vm2053_vm8, %v362_v18, -1e+30  ;;  %v436_v25 = vsel %vm2052_vm9, %v362_v18, -1e+30  ;;  %v438_v30 = vsel %vm2098_vm12, %v362_v18, -1e+30 }
 0x207   :  { %v440_v31 = vsel %vm2091_vm5, %v362_v18, -1e+30  ;;  %v442_v32 = vsel %vm2086_vm13, %v362_v18, -1e+30  ;;  %vm2055_vm9 = vcmp.eq.s32.totalorder %v1578_v13, 1  ;;  %vm2054_vm8 = vcmp.eq.s32.totalorder %v1615_v28, 1 }
 0x208   :  { %v359_v23 = vpop.f32.mrf.mxu3  ;;  %v444_v33 = vsel %vm301_vm7, %v428_v19, -inf  ;;  %v453_v36 = vsel %vm301_vm7, %v430_v20, -inf  ;;  %v462_v37 = vsel %vm301_vm7, %v432_v21, -inf  ;;  %v471_v38 = vsel %vm301_vm7, %v434_v24, -inf }
 0x209   :  { %v360_v29 = vadd.f32 %v1573_v63, %v359_v23  ;;  %v480_v40 = vsel %vm301_vm7, %v436_v25, -inf  ;;  %v489_v41 = vsel %vm301_vm7, %v438_v30, -inf  ;;  %v498_v42 = vsel %vm301_vm7, %v440_v31, -inf }
 0x20a   :  { %v507_v43 = vsel %vm301_vm7, %v442_v32, -inf  ;;  %vm578_vm13 = vcmask 1044484   ;;  %vm2093_vm5 = vcmask 1047559  }
 0x20b   :  { %v363_v35 = vmax.f32 %v360_v29, 0.0  ;;  %v1681_v29 = vld [vmem:[%s2047_s4 + $0x60] sm:$0xff] }
 0x20c   :  { %607 = vmatpush.msrb.mxu0 %v1681_v29 }
 0x20d   :  { %v429_v48 = vsel %vm2085_vm1, %v363_v35, -1e+30  ;;  %v431_v49 = vsel %vm2084_vm3, %v363_v35, -1e+30  ;;  %v433_v51 = vsel %vm2063_vm4, %v363_v35, -1e+30 }
 0x20e   :  { %v435_v52 = vsel %vm2058_vm11, %v363_v35, -1e+30  ;;  %v437_v53 = vsel %vm2057_vm10, %v363_v35, -1e+30  ;;  %v439_v11 = vsel %vm2056_vm14, %v363_v35, -1e+30 }
 0x20f   :  { %v441_v9 = vsel %vm2055_vm9, %v363_v35, -1e+30  ;;  %v443_v18 = vsel %vm2054_vm8, %v363_v35, -1e+30  ;;  %v445_v19 = vsel %vm301_vm7, %v429_v48, -inf  ;;  %v454_v20 = vsel %vm301_vm7, %v431_v49, -inf }
 0x210   :  { %v446_v21 = vmax.f32 %v444_v33, %v445_v19  ;;  %v455_v23 = vmax.f32 %v453_v36, %v454_v20  ;;  %v463_v24 = vsel %vm301_vm7, %v433_v51, -inf  ;;  %v472_v25 = vsel %vm301_vm7, %v435_v52, -inf  ;;  %v1689_v51 = vld [vmem:[%s2047_s4 + $0x58] sm:$0xff] }
 0x211   :  { %v464_v30 = vmax.f32 %v462_v37, %v463_v24  ;;  %v473_v31 = vmax.f32 %v471_v38, %v472_v25  ;;  %v481_v32 = vsel %vm301_vm7, %v437_v53, -inf  ;;  %v490_v35 = vsel %vm301_vm7, %v439_v11, -inf  ;;  %608 = vmatpush.msrb.mxu0 %v1689_v51 }
 0x212   :  { %v447_v48 = vrot.slane %v446_v21, 4  ;;  %v456_v33 = vrot.slane %v455_v23, 4  ;;  %v482_v36 = vmax.f32 %v480_v40, %v481_v32  ;;  %v491_v49 = vmax.f32 %v489_v41, %v490_v35  ;;  %v1696_v40 = vpop.permute.xlu1 %531 }
 0x213   :  { %v465_v52 = vrot.slane %v464_v30, 4  ;;  %v474_v19 = vrot.slane %v473_v31, 4  ;;  %v499_v37 = vsel %vm301_vm7, %v441_v9, -inf  ;;  %v508_v38 = vsel %vm301_vm7, %v443_v18, -inf  ;;  %v1700_v9 = vpop.permute.xlu2 %534 }
 0x214   :  { %v448_v53 = vmax.f32 %v446_v21, %v447_v48  ;;  %v457_v11 = vmax.f32 %v455_v23, %v456_v33  ;;  %v483_v20 = vrot.slane %v482_v36, 4  ;;  %v492_v24 = vrot.slane %v491_v49, 4  ;;  %v1702_v33 = vpop.permute.xlu0 %537 }
 0x215   :  { %vm2087_vm8 = vcmp.eq.s32.totalorder %v1638_v39, 1  ;;  %vm2088_vm9 = vcmp.eq.s32.totalorder %v1654_v47, 1  ;;  %v466_v41 = vmax.f32 %v464_v30, %v465_v52  ;;  %v475_v25 = vmax.f32 %v473_v31, %v474_v19 }
 0x216   :  { %v500_v32 = vmax.f32 %v498_v42, %v499_v37  ;;  %v509_v35 = vmax.f32 %v507_v43, %v508_v38  ;;  %vm2090_vm14 = vcmask 1041409   ;;  %vm2089_vm10 = vcmp.eq.s32.totalorder %v1696_v40, 1 }
 0x217   :  { %v449_v18 = vrot.slane %v448_v53, 2  ;;  %v458_v21 = vrot.slane %v457_v11, 2  ;;  %v484_v23 = vmax.f32 %v482_v36, %v483_v20  ;;  %v493_v48 = vmax.f32 %v491_v49, %v492_v24 }
 0x218   :  { %vm574_vm11 = vcmask 1042434   ;;  %v467_v28 = vrot.slane %v466_v41, 2  ;;  %v476_v13 = vrot.slane %v475_v25, 2  ;;  %v501_v30 = vrot.slane %v500_v32, 4 }
 0x219   :  { %v510_v31 = vrot.slane %v509_v35, 4  ;;  %vm2092_vm4 = vcmp.eq.s32.totalorder %v1700_v9, 1  ;;  %v450_v42 = vmax.f32 %v448_v53, %v449_v18  ;;  %v459_v43 = vmax.f32 %v457_v11, %v458_v21 }
 0x21a   :  { %v485_v52 = vrot.slane %v484_v23, 2  ;;  %v494_v19 = vrot.slane %v493_v48, 2  ;;  %v468_v37 = vmax.f32 %v466_v41, %v467_v28  ;;  %v477_v38 = vmax.f32 %v475_v25, %v476_v13  ;;  %v1709_v25 = vpop.permute.xlu1 %540 }
 0x21b   :  { %v502_v62 = vmax.f32 %v500_v32, %v501_v30  ;;  %v511_v60 = vmax.f32 %v509_v35, %v510_v31  ;;  %v451_v59 = vrot.slane %v450_v42, 1  ;;  %v460_v36 = vrot.slane %v459_v43, 1 }
 0x21c   :  { %v486_v49 = vmax.f32 %v484_v23, %v485_v52  ;;  %v495_v20 = vmax.f32 %v493_v48, %v494_v19  ;;  %v469_v24 = vrot.slane %v468_v37, 1  ;;  %v478_v58 = vrot.slane %v477_v38, 1 }
 0x21d   :  { %v503_v55 = vrot.slane %v502_v62, 2  ;;  %v512_v54 = vrot.slane %v511_v60, 2  ;;  %v452_v17 = vmax.f32 %v450_v42, %v451_v59  ;;  %v461_v2 = vmax.f32 %v459_v43, %v460_v36 }
 0x21e   :  { %v487_v61 = vrot.slane %v486_v49, 1  ;;  %v496_v1 = vrot.slane %v495_v20, 1  ;;  %v470_v53 = vmax.f32 %v468_v37, %v469_v24  ;;  %v479_v11 = vmax.f32 %v477_v38, %v478_v58  ;;  %v1717_v58 = vpop.permute.xlu0 %546  ;;  %v43_v37 = vld [vmem:[%s2047_s4 + $0x50] sm:$0xff]  ;;  %v1745_v38 = vld [vmem:[%s2047_s4 + $0xa8] sm:$0xff]  ;;  %v1767_v24 = vld [vmem:[%s2047_s4 + $0x98] sm:$0xff] }
 0x21f   :  { %v504_v18 = vmax.f32 %v502_v62, %v503_v55  ;;  %v513_v21 = vmax.f32 %v511_v60, %v512_v54  ;;  %v556_v13 = vsel %vm2087_vm8, %v452_v17, 0.0  ;;  %v557_v41 = vsel %vm2088_vm9, %v461_v2, 0.0  ;;  %v1714_v55 = vpop.permute.xlu2 %543  ;;  %609 = vmatpush.msrb.mxu0 %v43_v37  ;;  %630 = vmatpush.msrb.mxu1 %v1745_v38 }
 0x220   :  { %v488_v28 = vmax.f32 %v486_v49, %v487_v61  ;;  %vm576_vm3 = vcmask 1043459   ;;  %v497_v32 = vmax.f32 %v495_v20, %v496_v1  ;;  %v558_v23 = vsel %vm2089_vm10, %v470_v53, 0.0  ;;  %v1762_v20 = vld [vmem:[%s2047_s4 + $0xa0] sm:$0xff] }
 0x221   :  { %v505_v35 = vrot.slane %v504_v18, 1  ;;  %v514_v59 = vrot.slane %v513_v21, 1  ;;  %vm552_vm1 = vcmp.eq.s32.totalorder %v1702_v33, 1  ;;  %v573_v54 = vsel %vm2090_vm14, %v557_v41, %v556_v13  ;;  %711 = vmatpush.msra.mxu0 %v1492_v56  ;;  %631 = vmatpush.msrb.mxu1 %v1762_v20 }
 0x222   :  { %vm580_vm8 = vcmask 1045509   ;;  %v559_v1 = vsel %vm2092_vm4, %v479_v11, 0.0  ;;  %v575_v62 = vsel %vm574_vm11, %v558_v23, %v573_v54  ;;  %vm553_vm9 = vcmp.eq.s32.totalorder %v1709_v25, 1 }
 0x223   :  { %v506_v60 = vmax.f32 %v504_v18, %v505_v35  ;;  %v515_v61 = vmax.f32 %v513_v21, %v514_v59  ;;  %v560_v2 = vsel %vm552_vm1, %v488_v28, 0.0  ;;  %v577_v17 = vsel %vm576_vm3, %v559_v1, %v575_v62  ;;  %712 = vmatpush.msra.mxu0 %v1504_v8  ;;  %632 = vmatpush.msrb.mxu1 %v1767_v24  ;;  %v1801_v28 = vld [vmem:[%s2047_s4 + $0x6] ss:$0 sm:$0xff] }
 0x224   :  { %vm2100_vm10 = vcmask 1046534   ;;  %vm554_vm14 = vcmp.eq.s32.totalorder %v1714_v55, 1  ;;  %v561_v48 = vsel %vm553_vm9, %v497_v32, 0.0  ;;  %v579_v30 = vsel %vm578_vm13, %v560_v2, %v577_v17  ;;  %v2117_v2 = vld [vmem:[#allocation8_spill] sm:$0xff]  ;;  %v58_v55 = vld [vmem:[%s2047_s4 + $0xc8] sm:$0xff] }
 0x225   :  { %vm555_vm4 = vcmp.eq.s32.totalorder %v1717_v58, 1  ;;  %v562_v31 = vsel %vm554_vm14, %v506_v60, 0.0  ;;  %v581_v42 = vsel %vm580_vm8, %v561_v48, %v579_v30  ;;  %713 = vmatpush.msra.mxu0 %v1511_v10  ;;  %v2118_v48 = vld [vmem:[#allocation10_spill] sm:$0xff] }
 0x226   :  { %v563_v43 = vsel %vm555_vm4, %v515_v61, 0.0  ;;  %v583_v52 = vsel %vm2100_vm10, %v562_v31, %v581_v42  ;;  %v2115_v61 = vld [vmem:[#allocation6_spill] sm:$0xff]  ;;  %v2120_v31 = vld [vmem:[#allocation12_spill] sm:$0xff] }
 0x227   :  { %v585_v19 = vsel %vm2093_vm5, %v563_v43, %v583_v52  ;;  %714 = vmatpush.msra.mxu0 %v1517_v16  ;;  %vm2095_vm5 = vcmask 523264  }
 0x228   :  { %586 = vrot.lane.b32.xlu1 %v585_v19, %s1283_s10 }
 0x29a   :  { %v587_v36 = vpop.permute.xlu1 %586 }
 0x29b   :  { %v589_v49 = vsel %vm301_vm7, %v1337_v4, %v587_v36  ;;  %v1773_v4 = vld [vmem:[%s2047_s4 + $0x90] sm:$0xff] }
 0x29c   :  { %1235 = vmatmul.msk.f32.vlgmr.msrb.gmra.mxu0 %vm2095_vm5, %v589_v49  ;;  %633 = vmatpush.msrb.mxu1 %v1773_v4  ;;  %vm2116_vm5 = vcmp.eq.s32.totalorder %v2115_v61, 1 }
 0x29d   :  { %928 = vmatpush.msrb.mxu0 %v1344_v5  ;;  %v1271_v5 = vld [vmem:[%s2047_s4 + $0x4] ss:$0 sm:$0xff] }
 0x29e   :  { %850 = vmatpush.msra.mxu1 %v1608_v26 }
 0x29f   :  { %929 = vmatpush.msrb.mxu0 %v1349_v6  ;;  %v270_v6 = vpop.permute.xlu2 %269 }
 0x2a0   :  { %851 = vmatpush.msra.mxu1 %v1613_v27 }
 0x2a1   :  { %930 = vmatpush.msrb.mxu0 %v1355_v7  ;;  %v1272_v7 = vld [vmem:[%s2047_s4 + $0x5] ss:$0 sm:$0xff] }
 0x2a2   :  { %852 = vmatpush.msra.mxu1 %v1632_v34 }
 0x2a3   :  { %931 = vmatpush.msrb.mxu0 %v1376_v15  ;;  %v273_v15 = vmul.f32 %v1271_v5, %v270_v6 }
 0x2a4   :  { %853 = vmatpush.msra.mxu1 %v1647_v45 }
 0x2a5   :  { %v1790_v53 = vadd.f32 %v1272_v7, %v273_v15  ;;  %v2122_v15 = vld [vmem:[#allocation2_spill] sm:$0xff] }
 0x2a6   :  { %854 = vmatpush.msra.mxu1 %v1652_v46 }
 0x2a8   :  { %855 = vmatpush.msra.mxu1 %v1681_v29 }
 0x2aa   :  { %856 = vmatpush.msra.mxu1 %v1689_v51 }
 0x2ac   :  { %857 = vmatpush.msra.mxu1 %v43_v37 }
 0x319   :  { %v611_v11 = vpop.f32.mrf.mxu0 }
 0x31a   :  { %v612_v18 = vadd.f32 %v611_v11, %v1790_v53 }
 0x31c   :  { %v614_v21 = vmax.f32 %v612_v18, 0.0  ;;  %v2124_v18 = vld [vmem:[#allocation3_spill] sm:$0xff] }
 0x31e   :  { %1236 = vmatmul.msk.f32.vlgmr.msrb.gmra.mxu1 %vm301_vm7, %v614_v21 }
 0x31f   :  { %959 = vmatpush.msrb.mxu1 %v1492_v56 }
 0x321   :  { %960 = vmatpush.msrb.mxu1 %v1504_v8 }
 0x323   :  { %961 = vmatpush.msrb.mxu1 %v1511_v10 }
 0x325   :  { %962 = vmatpush.msrb.mxu1 %v1517_v16 }
 0x39b   :  { %v635_v13 = vpop.f32.mrf.mxu1 }
 0x39c   :  { %v1804_v41 = vadd.f32 %v1801_v28, %v635_v13  ;;  %v2126_v13 = vld [vmem:[#allocation4_spill] sm:$0xff] }
 0x39e   :  { %v2101_v32 = vmax.f32 %v1804_v41, 0.0 }
 0x3a0   :  { %654 = vmatpush.msrb.mxu2 %v2101_v32 }
 0x3a1   :  { %1237 = vmatmul.msk.f32.vlgmr.msrb.gmra.mxu2 %vm2094_vm0, %v1360_v12 }
 0x3a2   :  { %878 = vmatpush.msra.mxu2 %v1745_v38 }
 0x3a4   :  { %879 = vmatpush.msra.mxu2 %v1762_v20 }
 0x3a6   :  { %880 = vmatpush.msra.mxu2 %v1767_v24 }
 0x3a8   :  { %881 = vmatpush.msra.mxu2 %v1773_v4 }
 0x3a9   :  { %1238 = vmatmul.msk.f32.gmra.mxu2 %vm2094_vm0, %v1367_v14  ;;  %vm2114_vm0 = vcmp.eq.s32.totalorder %v1558_v22, 1 }
 0x3aa   :  { %1098 = vmatpush.msrb.mxu2 %v1608_v26 }
 0x3ac   :  { %1099 = vmatpush.msrb.mxu2 %v1613_v27 }
 0x3ae   :  { %1100 = vmatpush.msrb.mxu2 %v1632_v34 }
 0x3b0   :  { %1101 = vmatpush.msrb.mxu2 %v1647_v45 }
 0x3b2   :  { %1102 = vmatpush.msrb.mxu2 %v1652_v46 }
 0x3b4   :  { %1103 = vmatpush.msrb.mxu2 %v1681_v29 }
 0x3b6   :  { %1104 = vmatpush.msrb.mxu2 %v1689_v51 }
 0x3b8   :  { %1105 = vmatpush.msrb.mxu2 %v43_v37 }
 0x424   :  { %v656_v56 = vpop.f32.mrf.mxu2 }
 0x425   :  { %1239 = vmatmul.msk.f32.vlgmr.msrb.gmra.mxu3 %vm301_vm7, %v656_v56 }
 0x42c   :  { %v659_v8 = vpop.f32.mrf.mxu2 }
 0x42d   :  { %1240 = vmatmul.msk.f32.gmra.mxu3 %vm301_vm7, %v659_v8  ;;  %v2128_v8 = vld [vmem:[#allocation5_spill] sm:$0xff] }
 0x4a8   :  { %v685_v10 = vpop.f32.mrf.mxu3 }
 0x4a9   :  { %v686_v16 = vadd.f32 %v685_v10, %v1536_v44 }
 0x4ab   :  { %v691_v26 = vmax.f32 %v686_v16, 0.0  ;;  %v2130_v16 = vld [vmem:[#allocation7_spill] sm:$0xff] }
 0x4ad   :  { %1241 = vmatmul.msk.f32.vlgmr.msra.gmra.mxu0 %vm301_vm7, %v691_v26 }
 0x4ae   :  { %1151 = vmatpush.msra.mxu0 %v58_v55 }
 0x4b0   :  { %v688_v27 = vpop.f32.mrf.mxu3 }
 0x4b1   :  { %v689_v34 = vadd.f32 %v688_v27, %v1542_v50  ;;  %v2132_v27 = vld [vmem:[#allocation9_spill] sm:$0xff] }
 0x4b3   :  { %v692_v45 = vmax.f32 %v689_v34, 0.0 }
 0x4b5   :  { %1242 = vmatmul.msk.f32.gmra.mxu0 %vm301_vm7, %v692_v45  ;;  %v2134_v45 = vld [vmem:[#allocation11_spill] sm:$0xff] }
 0x4b6   :  { %vm2135_vm10 = vcmp.eq.s32.totalorder %v2134_v45, 1 }
 0x52a   :  { %v716_v46 = vpop.f32.mrf.mxu0 }
 0x52b   :  { %v717_v29 = vadd.f32 %v1573_v63, %v716_v46 }
 0x52d   :  { %v722_v51 = vmax.f32 %v717_v29, 0.0  ;;  %v2136_v29 = vld [vmem:[#allocation13_spill] sm:$0xff] }
 0x52f   :  { %v724_v35 = vsel %vm2096_vm15, %v722_v51, -1e+30  ;;  %v726_v59 = vsel %vm2097_vm2, %v722_v51, -1e+30  ;;  %v728_v54 = vsel %vm2099_vm6, %v722_v51, -1e+30 }
 0x530   :  { %v730_v60 = vsel %vm2114_vm0, %v722_v51, -1e+30  ;;  %v732_v1 = vsel %vm2116_vm5, %v722_v51, -1e+30  ;;  %v734_v17 = vsel %vm2098_vm12, %v722_v51, -1e+30 }
 0x531   :  { %vm2119_vm15 = vcmp.eq.s32.totalorder %v2118_v48, 1  ;;  %vm2121_vm2 = vcmp.eq.s32.totalorder %v2120_v31, 1  ;;  %v740_v43 = vsel %vm301_vm7, %v724_v35, -inf  ;;  %v749_v19 = vsel %vm301_vm7, %v726_v59, -inf }
 0x532   :  { %v719_v23 = vpop.f32.mrf.mxu0  ;;  %v736_v30 = vsel %vm2119_vm15, %v722_v51, -1e+30  ;;  %v738_v42 = vsel %vm2121_vm2, %v722_v51, -1e+30  ;;  %v758_v37 = vsel %vm301_vm7, %v728_v54, -inf  ;;  %v767_v36 = vsel %vm301_vm7, %v730_v60, -inf }
 0x533   :  { %v720_v62 = vadd.f32 %v1573_v63, %v719_v23  ;;  %v776_v49 = vsel %vm301_vm7, %v732_v1, -inf  ;;  %v785_v5 = vsel %vm301_vm7, %v734_v17, -inf  ;;  %v794_v6 = vsel %vm301_vm7, %v736_v30, -inf }
 0x534   :  { %v803_v7 = vsel %vm301_vm7, %v738_v42, -inf  ;;  %vm2123_vm0 = vcmp.eq.s32.totalorder %v2122_v15, 1  ;;  %vm2125_vm15 = vcmp.eq.s32.totalorder %v2124_v18, 1  ;;  %vm2127_vm2 = vcmp.eq.s32.totalorder %v2126_v13, 1 }
 0x535   :  { %v723_v52 = vmax.f32 %v720_v62, 0.0  ;;  %vm2129_vm5 = vcmp.eq.s32.totalorder %v2128_v8, 1  ;;  %vm2131_vm12 = vcmp.eq.s32.totalorder %v2130_v16, 1  ;;  %vm2133_vm6 = vcmp.eq.s32.totalorder %v2132_v27, 1 }
 0x537   :  { %v725_v11 = vsel %vm2123_vm0, %v723_v52, -1e+30  ;;  %v727_v21 = vsel %vm2125_vm15, %v723_v52, -1e+30  ;;  %v729_v56 = vsel %vm2127_vm2, %v723_v52, -1e+30 }
 0x538   :  { %v731_v10 = vsel %vm2129_vm5, %v723_v52, -1e+30  ;;  %v733_v26 = vsel %vm2131_vm12, %v723_v52, -1e+30  ;;  %v735_v34 = vsel %vm2133_vm6, %v723_v52, -1e+30 }
 0x539   :  { %v737_v46 = vsel %vm2135_vm10, %v723_v52, -1e+30  ;;  %vm2137_vm0 = vcmp.eq.s32.totalorder %v2136_v29, 1  ;;  %v741_v35 = vsel %vm301_vm7, %v725_v11, -inf  ;;  %v750_v59 = vsel %vm301_vm7, %v727_v21, -inf }
 0x53a   :  { %v739_v51 = vsel %vm2137_vm0, %v723_v52, -1e+30  ;;  %v742_v23 = vmax.f32 %v740_v43, %v741_v35  ;;  %v751_v54 = vmax.f32 %v749_v19, %v750_v59  ;;  %v759_v60 = vsel %vm301_vm7, %v729_v56, -inf }
 0x53b   :  { %v768_v1 = vsel %vm301_vm7, %v731_v10, -inf  ;;  %v760_v62 = vmax.f32 %v758_v37, %v759_v60  ;;  %v777_v30 = vsel %vm301_vm7, %v733_v26, -inf  ;;  %v786_v42 = vsel %vm301_vm7, %v735_v34, -inf }
 0x53c   :  { %v769_v17 = vmax.f32 %v767_v36, %v768_v1  ;;  %v743_v32 = vrot.slane %v742_v23, 4  ;;  %v752_v45 = vrot.slane %v751_v54, 4  ;;  %v778_v29 = vmax.f32 %v776_v49, %v777_v30 }
 0x53d   :  { %v787_v52 = vmax.f32 %v785_v5, %v786_v42  ;;  %v761_v27 = vrot.slane %v760_v62, 4  ;;  %v795_v21 = vsel %vm301_vm7, %v737_v46, -inf  ;;  %v804_v43 = vsel %vm301_vm7, %v739_v51, -inf }
 0x53e   :  { %v770_v11 = vrot.slane %v769_v17, 4  ;;  %v744_v19 = vmax.f32 %v742_v23, %v743_v32  ;;  %v753_v56 = vmax.f32 %v751_v54, %v752_v45  ;;  %v779_v35 = vrot.slane %v778_v29, 4 }
 0x53f   :  { %v788_v10 = vrot.slane %v787_v52, 4  ;;  %v762_v37 = vmax.f32 %v760_v62, %v761_v27  ;;  %v796_v59 = vmax.f32 %v794_v6, %v795_v21  ;;  %v805_v26 = vmax.f32 %v803_v7, %v804_v43 }
 0x540   :  { %v771_v36 = vmax.f32 %v769_v17, %v770_v11  ;;  %v745_v60 = vrot.slane %v744_v19, 2  ;;  %v754_v34 = vrot.slane %v753_v56, 2  ;;  %v780_v1 = vmax.f32 %v778_v29, %v779_v35 }
 0x541   :  { %v789_v16 = vmax.f32 %v787_v52, %v788_v10  ;;  %v763_v49 = vrot.slane %v762_v37, 2  ;;  %v797_v30 = vrot.slane %v796_v59, 4  ;;  %v806_v42 = vrot.slane %v805_v26, 4 }
 0x542   :  { %v772_v5 = vrot.slane %v771_v36, 2  ;;  %v746_v8 = vmax.f32 %v744_v19, %v745_v60  ;;  %v755_v46 = vmax.f32 %v753_v56, %v754_v34  ;;  %v781_v13 = vrot.slane %v780_v1, 2 }
 0x543   :  { %v790_v51 = vrot.slane %v789_v16, 2  ;;  %v764_v32 = vmax.f32 %v762_v37, %v763_v49  ;;  %v798_v23 = vmax.f32 %v796_v59, %v797_v30  ;;  %v807_v54 = vmax.f32 %v805_v26, %v806_v42 }
 0x544   :  { %v773_v45 = vmax.f32 %v771_v36, %v772_v5  ;;  %v747_v27 = vrot.slane %v746_v8, 1  ;;  %v756_v62 = vrot.slane %v755_v46, 1  ;;  %v782_v6 = vmax.f32 %v780_v1, %v781_v13 }
 0x545   :  { %v791_v7 = vmax.f32 %v789_v16, %v790_v51  ;;  %v765_v17 = vrot.slane %v764_v32, 1  ;;  %v799_v29 = vrot.slane %v798_v23, 2  ;;  %v808_v52 = vrot.slane %v807_v54, 2 }
 0x546   :  { %v774_v11 = vrot.slane %v773_v45, 1  ;;  %v748_v21 = vmax.f32 %v746_v8, %v747_v27  ;;  %v757_v43 = vmax.f32 %v755_v46, %v756_v62  ;;  %v783_v35 = vrot.slane %v782_v6, 1 }
 0x547   :  { %v792_v10 = vrot.slane %v791_v7, 1  ;;  %v766_v19 = vmax.f32 %v764_v32, %v765_v17  ;;  %v800_v60 = vmax.f32 %v798_v23, %v799_v29  ;;  %v809_v34 = vmax.f32 %v807_v54, %v808_v52 }
 0x548   :  { %v775_v56 = vmax.f32 %v773_v45, %v774_v11  ;;  %v784_v37 = vmax.f32 %v782_v6, %v783_v35  ;;  %vm2138_vm6 = vcmp.eq.s32.totalorder %v1638_v39, 1  ;;  %vm2139_vm10 = vcmp.eq.s32.totalorder %v1654_v47, 1 }
 0x549   :  { %v812_v36 = vsel %vm2138_vm6, %v748_v21, 0.0  ;;  %v813_v13 = vsel %vm2139_vm10, %v757_v43, 0.0  ;;  %v793_v16 = vmax.f32 %v791_v7, %v792_v10  ;;  %v801_v59 = vrot.slane %v800_v60, 1 }
 0x54a   :  { %v810_v26 = vrot.slane %v809_v34, 1  ;;  %vm2140_vm12 = vcmp.eq.s32.totalorder %v1696_v40, 1  ;;  %vm2141_vm15 = vcmask 1041409   ;;  %vm2142_vm2 = vcmp.eq.s32.totalorder %v1700_v9, 1 }
 0x54b   :  { %v814_v8 = vsel %vm2140_vm12, %v766_v19, 0.0  ;;  %v828_v1 = vsel %vm2141_vm15, %v813_v13, %v812_v36  ;;  %v802_v49 = vmax.f32 %v800_v60, %v801_v59  ;;  %v815_v30 = vsel %vm2142_vm2, %v775_v56, 0.0 }
 0x54c   :  { %v811_v5 = vmax.f32 %v809_v34, %v810_v26  ;;  %v829_v42 = vsel %vm574_vm11, %v814_v8, %v828_v1  ;;  %v816_v46 = vsel %vm552_vm1, %v784_v37, 0.0  ;;  %v817_v32 = vsel %vm553_vm9, %v793_v16, 0.0 }
 0x54d   :  { %v830_v51 = vsel %vm576_vm3, %v815_v30, %v829_v42  ;;  %v818_v23 = vsel %vm554_vm14, %v802_v49, 0.0  ;;  %vm2143_vm5 = vcmask 1046534   ;;  %vm2144_vm0 = vcmask 1047559   ;;  %v2159_v30 = vld [vmem:[#allocation4_spill] sm:$0xff] }
 0x54e   :  { %v831_v45 = vsel %vm578_vm13, %v816_v46, %v830_v51  ;;  %v819_v27 = vsel %vm555_vm4, %v811_v5, 0.0  ;;  %v2145_v17 = vmax.f32 %v1804_v41, 0.0  ;;  %vm2146_vm6 = vcmask 523264   ;;  %v2161_v46 = vld [vmem:[#allocation5_spill] sm:$0xff] }
 0x54f   :  { %v832_v54 = vsel %vm580_vm8, %v817_v32, %v831_v45  ;;  %vm2147_vm10 = vcmask 64512   ;;  %vm2149_vm15 = vcmp.eq.s32.totalorder %v1550_v3, 1  ;;  %vm2150_vm2 = vcmp.eq.s32.totalorder %v1548_v0, 1  ;;  %v2163_v32 = vld [vmem:[#allocation7_spill] sm:$0xff] }
 0x550   :  { %v833_v62 = vsel %vm2143_vm5, %v818_v23, %v832_v54  ;;  %vm2148_vm12 = vmmov %vm2147_vm10  ;;  %vm2151_vm5 = vcmp.eq.s32.totalorder %v1554_v57, 1  ;;  %v2165_v23 = vld [vmem:[#allocation9_spill] sm:$0xff] }
 0x551   :  { %v834_v6 = vsel %vm2144_vm0, %v819_v27, %v833_v62  ;;  %vm2152_vm0 = vcmp.eq.s32.totalorder %v1558_v22, 1  ;;  %v2167_v27 = vld [vmem:[#allocation11_spill] sm:$0xff] }
 0x552   :  { %835 = vrot.lane.b32.xlu0 %v834_v6, %s1283_s10 }
 0x5c4   :  { %v836_v7 = vpop.permute.xlu0 %835 }
 0x5c5   :  { %v838_v11 = vsel %vm301_vm7, %v2145_v17, %v836_v7 }
 0x5c6   :  { %1243 = vmatmul.msk.f32.vlgmr.msra.gmra.mxu1 %vm2146_vm6, %v838_v11  ;;  %vm2153_vm6 = vcmp.eq.s32.totalorder %v2115_v61, 1 }
 0x643   :  { %v859_v29 = vpop.f32.mrf.mxu1 }
 0x644   :  { %v860_v52 = vadd.f32 %v859_v29, %v1790_v53 }
 0x646   :  { %v862_v21 = vmax.f32 %v860_v52, 0.0 }
 0x648   :  { %1244 = vmatmul.msk.f32.vlgmr.msra.gmra.mxu2 %vm301_vm7, %v862_v21 }
 0x6cb   :  { %v883_v43 = vpop.f32.mrf.mxu2 }
 0x6cc   :  { %v1911_v35 = vadd.f32 %v1801_v28, %v883_v43 }
 0x6ce   :  { %v886_v10 = vmax.f32 %v1911_v35, 0.0  ;;  %v56_v35 = vld [vmem:[%s2047_s4 + $0xb8] sm:$0xff] }
 0x6d0   :  { %902 = vmatpush.msra.mxu3 %v886_v10 }
 0x6d1   :  { %1245 = vmatmul.msk.f32.vlgmr.msra.gmra.mxu3 %vm2147_vm10, %v1360_v12  ;;  %vm2154_vm10 = vcmp.eq.s32.totalorder %v2117_v2, 1 }
 0x6d2   :  { %1126 = vmatpush.msrb.mxu3 %v1745_v38 }
 0x6d4   :  { %1127 = vmatpush.msrb.mxu3 %v1762_v20 }
 0x6d6   :  { %1128 = vmatpush.msrb.mxu3 %v1767_v24 }
 0x6d8   :  { %1129 = vmatpush.msrb.mxu3 %v1773_v4 }
 0x6d9   :  { %1246 = vmatmul.msk.f32.gmra.mxu3 %vm2148_vm12, %v1367_v14  ;;  %vm2155_vm12 = vcmp.eq.s32.totalorder %v2118_v48, 1 }
 0x754   :  { %v904_v41 = vpop.f32.mrf.mxu3 }
 0x755   :  { %1247 = vmatmul.msk.f32.vlgmr.msrb.gmra.mxu0 %vm301_vm7, %v904_v41 }
 0x75c   :  { %v907_v19 = vpop.f32.mrf.mxu3 }
 0x75d   :  { %1248 = vmatmul.msk.f32.gmra.mxu0 %vm301_vm7, %v907_v19 }
 0x7d2   :  { %v933_v56 = vpop.f32.mrf.mxu0 }
 0x7d3   :  { %v934_v12 = vadd.f32 %v933_v56, %v1536_v44 }
 0x7d5   :  { %v939_v60 = vmax.f32 %v934_v12, 0.0 }
 0x7d7   :  { %1249 = vmatmul.msk.f32.vlgmr.msrb.gmra.mxu1 %vm301_vm7, %v939_v60 }
 0x7da   :  { %v936_v38 = vpop.f32.mrf.mxu0 }
 0x7db   :  { %v937_v20 = vadd.f32 %v936_v38, %v1542_v50 }
 0x7dd   :  { %v940_v24 = vmax.f32 %v937_v20, 0.0 }
 0x7df   :  { %1250 = vmatmul.msk.f32.gmra.mxu1 %vm301_vm7, %v940_v24 }
 0x854   :  { %v964_v4 = vpop.f32.mrf.mxu1 }
 0x855   :  { %v965_v14 = vadd.f32 %v1573_v63, %v964_v4 }
 0x857   :  { %v970_v34 = vmax.f32 %v965_v14, 0.0 }
 0x859   :  { %v972_v37 = vsel %vm2149_vm15, %v970_v34, -1e+30  ;;  %v974_v36 = vsel %vm2150_vm2, %v970_v34, -1e+30  ;;  %v976_v13 = vsel %vm2151_vm5, %v970_v34, -1e+30 }
 0x85a   :  { %v978_v50 = vsel %vm2152_vm0, %v970_v34, -1e+30  ;;  %v980_v16 = vsel %vm2153_vm6, %v970_v34, -1e+30  ;;  %v982_v26 = vsel %vm2154_vm10, %v970_v34, -1e+30 }
 0x85b   :  { %v984_v3 = vsel %vm2155_vm12, %v970_v34, -1e+30  ;;  %vm2156_vm15 = vcmp.eq.s32.totalorder %v2120_v31, 1  ;;  %v988_v57 = vsel %vm301_vm7, %v972_v37, -inf  ;;  %v997_v22 = vsel %vm301_vm7, %v974_v36, -inf }
 0x85c   :  { %v967_v44 = vpop.f32.mrf.mxu1  ;;  %v986_v0 = vsel %vm2156_vm15, %v970_v34, -1e+30  ;;  %v1006_v1 = vsel %vm301_vm7, %v976_v13, -inf  ;;  %v1015_v61 = vsel %vm301_vm7, %v978_v50, -inf  ;;  %v1033_v2 = vsel %vm301_vm7, %v982_v26, -inf }
 0x85d   :  { %v968_v59 = vadd.f32 %v1573_v63, %v967_v44  ;;  %v1024_v63 = vsel %vm301_vm7, %v980_v16, -inf  ;;  %v1042_v49 = vsel %vm301_vm7, %v984_v3, -inf  ;;  %v1051_v48 = vsel %vm301_vm7, %v986_v0, -inf }
 0x85e   :  { %vm2157_vm2 = vcmp.eq.s32.totalorder %v2122_v15, 1  ;;  %vm2158_vm5 = vcmp.eq.s32.totalorder %v2124_v18, 1  ;;  %vm2160_vm0 = vcmp.eq.s32.totalorder %v2159_v30, 1  ;;  %vm2162_vm6 = vcmp.eq.s32.totalorder %v2161_v46, 1  ;;  %v2169_v15 = vld [vmem:[#allocation13_spill] sm:$0xff] }
 0x85f   :  { %v971_v8 = vmax.f32 %v968_v59, 0.0  ;;  %vm2164_vm10 = vcmp.eq.s32.totalorder %v2163_v32, 1  ;;  %vm2166_vm12 = vcmp.eq.s32.totalorder %v2165_v23, 1  ;;  %vm2168_vm15 = vcmp.eq.s32.totalorder %v2167_v27, 1 }
 0x861   :  { %v973_v31 = vsel %vm2157_vm2, %v971_v8, -1e+30  ;;  %v975_v5 = vsel %vm2158_vm5, %v971_v8, -1e+30  ;;  %v977_v42 = vsel %vm2160_vm0, %v971_v8, -1e+30 }
 0x862   :  { %v979_v51 = vsel %vm2162_vm6, %v971_v8, -1e+30  ;;  %v981_v45 = vsel %vm2164_vm10, %v971_v8, -1e+30  ;;  %v983_v54 = vsel %vm2166_vm12, %v971_v8, -1e+30 }
 0x863   :  { %v985_v62 = vsel %vm2168_vm15, %v971_v8, -1e+30  ;;  %vm2170_vm2 = vcmp.eq.s32.totalorder %v2169_v15, 1  ;;  %v989_v18 = vsel %vm301_vm7, %v973_v31, -inf  ;;  %v998_v7 = vsel %vm301_vm7, %v975_v5, -inf }
 0x864   :  { %v987_v6 = vsel %vm2170_vm2, %v971_v8, -1e+30  ;;  %v990_v17 = vmax.f32 %v988_v57, %v989_v18  ;;  %v999_v11 = vmax.f32 %v997_v22, %v998_v7  ;;  %v1007_v29 = vsel %vm301_vm7, %v977_v42, -inf }
 0x865   :  { %v1016_v52 = vsel %vm301_vm7, %v979_v51, -inf  ;;  %v1008_v21 = vmax.f32 %v1006_v1, %v1007_v29  ;;  %v1025_v41 = vsel %vm301_vm7, %v981_v45, -inf  ;;  %v1034_v19 = vsel %vm301_vm7, %v983_v54, -inf }
 0x866   :  { %v1017_v43 = vmax.f32 %v1015_v61, %v1016_v52  ;;  %v991_v56 = vrot.slane %v990_v17, 4  ;;  %v1000_v12 = vrot.slane %v999_v11, 4  ;;  %v1026_v60 = vmax.f32 %v1024_v63, %v1025_v41 }
 0x867   :  { %v1035_v38 = vmax.f32 %v1033_v2, %v1034_v19  ;;  %v1009_v20 = vrot.slane %v1008_v21, 4  ;;  %v1043_v4 = vsel %vm301_vm7, %v985_v62, -inf  ;;  %v1052_v14 = vsel %vm301_vm7, %v987_v6, -inf }
 0x868   :  { %v1018_v24 = vrot.slane %v1017_v43, 4  ;;  %v992_v34 = vmax.f32 %v990_v17, %v991_v56  ;;  %v1001_v37 = vmax.f32 %v999_v11, %v1000_v12  ;;  %v1027_v36 = vrot.slane %v1026_v60, 4 }
 0x869   :  { %v1036_v44 = vrot.slane %v1035_v38, 4  ;;  %v1010_v13 = vmax.f32 %v1008_v21, %v1009_v20  ;;  %v1044_v16 = vmax.f32 %v1042_v49, %v1043_v4  ;;  %v1053_v59 = vmax.f32 %v1051_v48, %v1052_v14 }
 0x86a   :  { %v1019_v50 = vmax.f32 %v1017_v43, %v1018_v24  ;;  %v993_v26 = vrot.slane %v992_v34, 2  ;;  %v1002_v3 = vrot.slane %v1001_v37, 2  ;;  %v1028_v0 = vmax.f32 %v1026_v60, %v1027_v36 }
 0x86b   :  { %v1037_v57 = vmax.f32 %v1035_v38, %v1036_v44  ;;  %v1011_v8 = vrot.slane %v1010_v13, 2  ;;  %v1045_v1 = vrot.slane %v1044_v16, 4  ;;  %v1054_v61 = vrot.slane %v1053_v59, 4 }
 0x86c   :  { %v1020_v22 = vrot.slane %v1019_v50, 2  ;;  %v994_v63 = vmax.f32 %v992_v34, %v993_v26  ;;  %v1003_v2 = vmax.f32 %v1001_v37, %v1002_v3  ;;  %v1029_v31 = vrot.slane %v1028_v0, 2 }
 0x86d   :  { %v1038_v5 = vrot.slane %v1037_v57, 2  ;;  %v1012_v30 = vmax.f32 %v1010_v13, %v1011_v8  ;;  %v1046_v46 = vmax.f32 %v1044_v16, %v1045_v1  ;;  %v1055_v51 = vmax.f32 %v1053_v59, %v1054_v61  ;;  %v57_v59 = vld [vmem:[%s2047_s4 + $0xc0] sm:$0xff]  ;;  %v60_v8 = vld [vmem:[%s2047_s4 + $0xd8] sm:$0xff] }
 0x86e   :  { %v1021_v42 = vmax.f32 %v1019_v50, %v1020_v22  ;;  %v995_v32 = vrot.slane %v994_v63, 1  ;;  %v1004_v45 = vrot.slane %v1003_v2, 1  ;;  %v1030_v49 = vmax.f32 %v1028_v0, %v1029_v31  ;;  %1152 = vmatpush.msra.mxu0 %v57_v59  ;;  %v59_v22 = vld [vmem:[%s2047_s4 + $0xd0] sm:$0xff] }
 0x86f   :  { %v1039_v48 = vmax.f32 %v1037_v57, %v1038_v5  ;;  %v1013_v23 = vrot.slane %v1012_v30, 1  ;;  %v1047_v27 = vrot.slane %v1046_v46, 2  ;;  %v1056_v62 = vrot.slane %v1055_v51, 2  ;;  %v61_v57 = vld [vmem:[%s2047_s4 + $0xe0] sm:$0xff] }
 0x870   :  { %v1022_v54 = vrot.slane %v1021_v42, 1  ;;  %v996_v15 = vmax.f32 %v994_v63, %v995_v32  ;;  %v1005_v6 = vmax.f32 %v1003_v2, %v1004_v45  ;;  %v1031_v18 = vrot.slane %v1030_v49, 1  ;;  %1153 = vmatpush.msra.mxu0 %v56_v35  ;;  %v1275_v2 = vld [vmem:[%s2047_s4 + $0x8] ss:$0 sm:$0xff] }
 0x871   :  { %v1040_v7 = vrot.slane %v1039_v48, 1  ;;  %v1014_v17 = vmax.f32 %v1012_v30, %v1013_v23  ;;  %v1048_v29 = vmax.f32 %v1046_v46, %v1047_v27  ;;  %v1057_v52 = vmax.f32 %v1055_v51, %v1056_v62 }
 0x872   :  { %v1023_v11 = vmax.f32 %v1021_v42, %v1022_v54  ;;  %v1032_v21 = vmax.f32 %v1030_v49, %v1031_v18  ;;  %vm2171_vm5 = vcmp.eq.s32.totalorder %v1638_v39, 1  ;;  %vm2172_vm0 = vcmp.eq.s32.totalorder %v1654_v47, 1 }
 0x873   :  { %v1060_v43 = vsel %vm2171_vm5, %v996_v15, 0.0  ;;  %v1061_v41 = vsel %vm2172_vm0, %v1005_v6, 0.0  ;;  %v1041_v19 = vmax.f32 %v1039_v48, %v1040_v7  ;;  %v1049_v56 = vrot.slane %v1048_v29, 1 }
 0x874   :  { %v1058_v12 = vrot.slane %v1057_v52, 1  ;;  %vm2173_vm6 = vcmp.eq.s32.totalorder %v1696_v40, 1  ;;  %vm2174_vm10 = vcmask 1041409   ;;  %vm2175_vm12 = vcmp.eq.s32.totalorder %v1700_v9, 1 }
 0x875   :  { %v1062_v60 = vsel %vm2173_vm6, %v1014_v17, 0.0  ;;  %v1076_v38 = vsel %vm2174_vm10, %v1061_v41, %v1060_v43  ;;  %v1050_v20 = vmax.f32 %v1048_v29, %v1049_v56  ;;  %v1063_v4 = vsel %vm2175_vm12, %v1023_v11, 0.0 }
 0x876   :  { %v1059_v24 = vmax.f32 %v1057_v52, %v1058_v12  ;;  %v1077_v14 = vsel %vm574_vm11, %v1062_v60, %v1076_v38  ;;  %v1064_v39 = vsel %vm552_vm1, %v1032_v21, 0.0  ;;  %v1065_v34 = vsel %vm553_vm9, %v1041_v19, 0.0 }
 0x877   :  { %v1078_v47 = vsel %vm576_vm3, %v1063_v4, %v1077_v14  ;;  %v1066_v37 = vsel %vm554_vm14, %v1050_v20, 0.0  ;;  %vm2176_vm15 = vcmask 1046534   ;;  %vm2177_vm11 = vcmask 1047559  }
 0x878   :  { %v1079_v40 = vsel %vm578_vm13, %v1064_v39, %v1078_v47  ;;  %v1067_v9 = vsel %vm555_vm4, %v1059_v24, 0.0  ;;  %vm2178_vm1 = vcmask 523264  }
 0x879   :  { %v1080_v36 = vsel %vm580_vm8, %v1065_v34, %v1079_v40  ;;  %vm1203_vm8 = vcmask 7168  }
 0x87a   :  { %v1081_v44 = vsel %vm2176_vm15, %v1066_v37, %v1080_v36 }
 0x87b   :  { %v1082_v33 = vsel %vm2177_vm11, %v1067_v9, %v1081_v44 }
 0x87c   :  { %1083 = vrot.lane.b32.xlu1 %v1082_v33, %s1283_s10 }
 0x8ee   :  { %v1084_v13 = vpop.permute.xlu1 %1083 }
 0x8ef   :  { %v1086_v25 = vsel %vm301_vm7, %v886_v10, %v1084_v13  ;;  %v55_v10 = vld [vmem:[%s2047_s4 + $0xb0] sm:$0xff] }
 0x8f0   :  { %1251 = vmatmul.msk.f32.vlgmr.msrb.gmra.mxu2 %vm2178_vm1, %v1086_v25  ;;  %1154 = vmatpush.msra.mxu0 %v55_v10 }
 0x973   :  { %v1107_v58 = vpop.f32.mrf.mxu2 }
 0x974   :  { %v1108_v50 = vadd.f32 %v1107_v58, %v1790_v53  ;;  %v62_v53 = vld [vmem:[%s2047_s4 + $0xe8] sm:$0xff] }
 0x975   :  { %1176 = vmatpush.msra.mxu1 %v62_v53 }
 0x976   :  { %v1110_v16 = vmax.f32 %v1108_v50, 0.0 }
 0x977   :  { %1177 = vmatpush.msra.mxu1 %v61_v57 }
 0x978   :  { %1252 = vmatmul.msk.f32.vlgmr.msrb.gmra.mxu3 %vm301_vm7, %v1110_v16 }
 0x979   :  { %1178 = vmatpush.msra.mxu1 %v60_v8 }
 0x97b   :  { %1179 = vmatpush.msra.mxu1 %v59_v22 }
 0x9fb   :  { %v1131_v26 = vpop.f32.mrf.mxu3 }
 0x9fc   :  { %v1132_v3 = vadd.f32 %v1801_v28, %v1131_v26  ;;  %v1274_v28 = vld [vmem:[%s2047_s4 + $0x7] ss:$0 sm:$0xff] }
 0x9fe   :  { %v1134_v0 = vmax.f32 %v1132_v3, 0.0 }
 0xa00   :  { %1253 = vmatmul.msk.f32.vlgmr.msra.gmra.mxu0 %vm301_vm7, %v1134_v0 }
 0xa7d   :  { %v1156_v1 = vpop.f32.mrf.mxu0 }
 0xa7e   :  { %v1157_v61 = vadd.f32 %v1274_v28, %v1156_v1 }
 0xa80   :  { %v1159_v63 = vmax.f32 %v1157_v61, 0.0 }
 0xa82   :  { %1254 = vmatmul.msk.f32.vlgmr.msra.gmra.mxu1 %vm301_vm7, %v1159_v63 }
 0xaff   :  { %v1181_v31 = vpop.f32.mrf.mxu1 }
 0xb00   :  { %v1182_v5 = vadd.f32 %v1275_v2, %v1181_v31 }
 0xb02   :  { %v1255_v30 = vmul.f32 -1.442695, %v1182_v5 }
 0xb04   :  { %1276 = vpow2.f32 %v1255_v30 }
 0xb0a   :  { %v1277_v42 = vpop.eup %1276 }
 0xb0b   :  { %v1187_v46 = vadd.f32 1.0, %v1277_v42 }
 0xb0d   :  { %1278 = vrcp.f32 %v1187_v46  ;;  %v1199_v49 = vand.u32 2147483648, %v1187_v46  ;;  %v1197_v23 = vand.u32 2147483647, %v1187_v46  ;;  %vm1193_vm7 = vweird.f32 %v1187_v46 }
 0xb0f   :  { %v1200_v27 = vor.u32 1.1754944e-38, %v1199_v49  ;;  %vm1198_vm9 = vcmp.eq.f32.partialorder %v1197_v23, 8.507059e+37 }
 0xb13   :  { %v1279_v51 = vpop.eup %1278 }
 0xb14   :  { %v1189_v32 = vmul.f32 %v1279_v51, %v1187_v46  ;;  %vm1194_vm3 = vweird.f32 %v1279_v51 }
 0xb15   :  { %vm1195_vm4 = vmor %vm1193_vm7, %vm1194_vm3 }
 0xb16   :  { %v1190_v45 = vsub.f32 1.0, %v1189_v32 }
 0xb18   :  { %v1191_v48 = vmul.f32 %v1279_v51, %v1190_v45 }
 0xb1a   :  { %v1192_v54 = vadd.f32 %v1279_v51, %v1191_v48 }
 0xb1c   :  { %v1196_v62 = vsel %vm1195_vm4, %v1279_v51, %v1192_v54 }
 0xb1d   :  { %v1201_v15 = vsel %vm1198_vm9, %v1200_v27, %v1196_v62 }
 0xb1e   :  { %1204 = vst.msk [vmem:[%s2051_s5] sm:$0xff] %vm1203_vm8, %v1201_v15 }

</bundles_post_ra>
